<compile_context>
chip_gen: v6e
topology: v6e:2x2x1
jax: 0.10.0
libtpu: 0.0.40
codegen_flags: <defaults>
</compile_context>

<pallas_src>
import functools
import math

import jax
import jax.numpy as jnp
from jax.experimental import pallas as pl
from jax.experimental.pallas import tpu as pltpu


_VMEM_LIMIT = 32 * 1024 * 1024  # explicit: safe on v5e/v6e (128 MiB) and v7x (64 MiB)


def _compiler_params():
    return pltpu.CompilerParams(
        dimension_semantics=("parallel",),
        vmem_limit_bytes=_VMEM_LIMIT,
    )


def _pick_tm(m, cap=256):
    """Row-tile size: multiple of 16 that divides m, close to `cap`, giving >= 2
    grid steps when m allows it (so both v7x TensorCores get work)."""
    if m <= cap:
        if m >= 32 and m % 32 == 0:
            return m // 2
        return m
    for tm in range(cap, 15, -16):
        if m % tm == 0:
            return tm
    return m


# ------------------------------ in-kernel math ------------------------------
def _erf(x):
    # Abramowitz & Stegun 7.1.26 (|abs err| < 1.5e-7): matches torch's exact
    # erf-GELU to float32 precision.
    # TODO(synk): use lax.erf directly once Mosaic grows an erf lowering.
    a1, a2, a3, a4, a5 = 0.254829592, -0.284496736, 1.421413741, -1.453152027, 1.061405429
    p = 0.3275911
    ax = jnp.abs(x)
    t = 1.0 / (1.0 + p * ax)
    poly = ((((a5 * t + a4) * t + a3) * t + a2) * t + a1) * t
    y = 1.0 - poly * jnp.exp(-ax * ax)
    return jnp.where(x >= 0, y, -y)


def _gelu(x):
    # exact (erf-based) GELU, matching torch.nn.GELU() default
    return 0.5 * x * (1.0 + _erf(x * 0.7071067811865476))


def _layernorm(x, gamma, beta, eps):
    mu = jnp.mean(x, axis=-1, keepdims=True)
    var = jnp.mean((x - mu) ** 2, axis=-1, keepdims=True)  # biased var (torch LayerNorm)
    return (x - mu) * jax.lax.rsqrt(var + eps) * gamma + beta


# ------------------------------ Pallas kernels -------------------------------
def _embed_kernel(tok_ref, w_ref, add_ref, o_ref):
    # One batch element per grid step: (Npad, f) @ (f, H) + additive table.
    # Row 0 of the token block is zeros (CLS slot -> W@0 = 0); the table carries
    # cls+pos for row 0, bias+pos for patch rows, and zeros for pad rows.
    y = jnp.dot(tok_ref[...].astype(jnp.bfloat16), w_ref[...],
                preferred_element_type=jnp.float32)
    o_ref[...] = (y + add_ref[...]).astype(o_ref.dtype)


def _attn_block_kernel(x_ref, g_ref, b_ref, wqkv_ref, bqkv_ref, wo_ref, bo_ref,
                       o_ref, *, head, head_dim, hidden, n_valid, eps):
    # out = MSA(LN1(x)) @ Wo + bo + x   -- one batch element per grid step.
    # The reference's 1/sqrt(hidden) score scale is folded into Wq at prep time.
    x = x_ref[...]
    xn = _layernorm(x, g_ref[...], b_ref[...], eps)
    qkv = jnp.dot(xn.astype(jnp.bfloat16), wqkv_ref[...],
                  preferred_element_type=jnp.float32) + bqkv_ref[...]
    n = x.shape[0]
    if n_valid < n:
        key_ids = jax.lax.broadcasted_iota(jnp.int32, (1, n), 1)
        mask_bias = jnp.where(key_ids < n_valid, 0.0, -1e30).astype(jnp.float32)
    else:
        mask_bias = None
    heads = []
    for h in range(head):
        q = qkv[:, h * head_dim:(h + 1) * head_dim].astype(jnp.bfloat16)
        k = qkv[:, hidden + h * head_dim: hidden + (h + 1) * head_dim].astype(jnp.bfloat16)
        v = qkv[:, 2 * hidden + h * head_dim: 2 * hidden + (h + 1) * head_dim].astype(jnp.bfloat16)
        s = jax.lax.dot_general(q, k, (((1,), (1,)), ((), ())),
                                preferred_element_type=jnp.float32)   # q @ k^T
        if mask_bias is not None:
            s = s + mask_bias                                         # mask padded keys
        s = s - jnp.max(s, axis=-1, keepdims=True)                    # stable softmax (f32)
        p = jnp.exp(s)
        p = p * pl.reciprocal(jnp.sum(p, axis=-1, keepdims=True), approx=True)
        heads.append(jnp.dot(p.astype(jnp.bfloat16), v, preferred_element_type=jnp.float32))
    attn = jnp.concatenate(heads, axis=-1).astype(jnp.bfloat16)       # (N, H), head-major lanes
    y = jnp.dot(attn, wo_ref[...], preferred_element_type=jnp.float32)
    o_ref[...] = (y + bo_ref[...] + x).astype(o_ref.dtype)


def _ln_mlp_kernel(x_ref, g_ref, b_ref, w1_ref, b1_ref, w2_ref, b2_ref, o_ref, *, eps):
    # out = GELU(GELU(LN2(x) @ W1 + b1) @ W2 + b2) + x, all in VMEM.
    x = x_ref[...]
    xn = _layernorm(x, g_ref[...], b_ref[...], eps)
    h = jnp.dot(xn.astype(jnp.bfloat16), w1_ref[...], preferred_element_type=jnp.float32)
    h = _gelu(h + b1_ref[...])
    y = jnp.dot(h.astype(jnp.bfloat16), w2_ref[...], preferred_element_type=jnp.float32)
    y = _gelu(y + b2_ref[...])            # reference MLP applies GELU after the 2nd Linear too
    o_ref[...] = (y + x).astype(o_ref.dtype)


def _ln_linear_kernel(x_ref, g_ref, b_ref, w_ref, bias_ref, o_ref, *, eps):
    # LayerNorm (f32 stats) fused as prologue of a linear (classifier head).
    xn = _layernorm(x_ref[...].astype(jnp.float32), g_ref[...], b_ref[...], eps)
    y = jnp.dot(xn.astype(jnp.bfloat16), w_ref[...], preferred_element_type=jnp.float32)
    o_ref[...] = (y + bias_ref[...]).astype(o_ref.dtype)


# ------------------------------ kernel wrappers ------------------------------
def embed_tokens(tokens2d, w, add_table, npad):
    m, f = tokens2d.shape
    hidden = w.shape[1]
    b = m // npad
    return pl.pallas_call(
        _embed_kernel,
        out_shape=jax.ShapeDtypeStruct((m, hidden), jnp.float32),
        grid=(b,),
        in_specs=[
            pl.BlockSpec((npad, f), lambda i: (i, 0)),
            pl.BlockSpec((f, hidden), lambda i: (0, 0)),
            pl.BlockSpec((npad, hidden), lambda i: (0, 0)),
        ],
        out_specs=pl.BlockSpec((npad, hidden), lambda i: (i, 0)),
        compiler_params=_compiler_params(),
    )(tokens2d, w, add_table)


def attn_block(x2d, la1_g, la1_b, w_qkv, b_qkv, wo, bo, *, head, hidden, npad,
               n_valid, eps=1e-5):
    m = x2d.shape[0]
    b = m // npad
    head_dim = hidden // head
    return pl.pallas_call(
        functools.partial(_attn_block_kernel, head=head, head_dim=head_dim,
                          hidden=hidden, n_valid=n_valid, eps=eps),
        out_shape=jax.ShapeDtypeStruct((m, hidden), jnp.float32),
        grid=(b,),
        in_specs=[
            pl.BlockSpec((npad, hidden), lambda i: (i, 0)),
            pl.BlockSpec((1, hidden), lambda i: (0, 0)),
            pl.BlockSpec((1, hidden), lambda i: (0, 0)),
            pl.BlockSpec((hidden, 3 * hidden), lambda i: (0, 0)),
            pl.BlockSpec((1, 3 * hidden), lambda i: (0, 0)),
            pl.BlockSpec((hidden, hidden), lambda i: (0, 0)),
            pl.BlockSpec((1, hidden), lambda i: (0, 0)),
        ],
        out_specs=pl.BlockSpec((npad, hidden), lambda i: (i, 0)),
        compiler_params=_compiler_params(),
    )(x2d, la1_g, la1_b, w_qkv, b_qkv, wo, bo)


def ln_mlp(x2d, gamma, beta, w1, b1, w2, b2, eps=1e-5):
    m, h = x2d.shape
    mh = w1.shape[1]
    tm = _pick_tm(m)
    return pl.pallas_call(
        functools.partial(_ln_mlp_kernel, eps=eps),
        out_shape=jax.ShapeDtypeStruct((m, h), jnp.float32),
        grid=(m // tm,),
        in_specs=[
            pl.BlockSpec((tm, h), lambda i: (i, 0)),
            pl.BlockSpec((1, h), lambda i: (0, 0)),
            pl.BlockSpec((1, h), lambda i: (0, 0)),
            pl.BlockSpec((h, mh), lambda i: (0, 0)),
            pl.BlockSpec((1, mh), lambda i: (0, 0)),
            pl.BlockSpec((mh, h), lambda i: (0, 0)),
            pl.BlockSpec((1, h), lambda i: (0, 0)),
        ],
        out_specs=pl.BlockSpec((tm, h), lambda i: (i, 0)),
        compiler_params=_compiler_params(),
    )(x2d, gamma, beta, w1, b1, w2, b2)


def ln_linear(x2d, gamma, beta, w, bias, eps=1e-5):
    m, k = x2d.shape
    n = w.shape[1]
    tm = _pick_tm(m)
    return pl.pallas_call(
        functools.partial(_ln_linear_kernel, eps=eps),
        out_shape=jax.ShapeDtypeStruct((m, n), jnp.float32),
        grid=(m // tm,),
        in_specs=[
            pl.BlockSpec((tm, k), lambda i: (i, 0)),
            pl.BlockSpec((1, k), lambda i: (0, 0)),
            pl.BlockSpec((1, k), lambda i: (0, 0)),
            pl.BlockSpec((k, n), lambda i: (0, 0)),
            pl.BlockSpec((1, n), lambda i: (0, 0)),
        ],
        out_specs=pl.BlockSpec((tm, n), lambda i: (i, 0)),
        compiler_params=_compiler_params(),
    )(x2d, gamma, beta, w, bias)


# ------------------------------ model (glue) ---------------------------------
def to_words(x, patch):
    """(b, c, h, w) -> (b, patch^2, ps*ps*c), matching ViT._to_words."""
    b, c, h, w = x.shape
    ps = h // patch
    out = x.reshape(b, c, patch, ps, patch, ps)      # [b,c,i,r,j,s]
    out = out.transpose(0, 2, 4, 3, 5, 1)            # [b,i,j,r,s,c]
    return out.reshape(b, patch * patch, ps * ps * c)


def encoder_layer(x2d, p, cfg, npad, n_valid):
    """omihub777 TransformerEncoder: out = msa(la1(x)) + x ; out = mlp(la2(out)) + out."""
    res1 = attn_block(x2d, p["la1_g"], p["la1_b"], p["w_qkv"], p["b_qkv"],
                      p["wo"], p["bo"], head=cfg["head"], hidden=cfg["hidden"],
                      npad=npad, n_valid=n_valid)
    return ln_mlp(res1, p["la2_g"], p["la2_b"], p["w1"], p["b1"], p["w2"], p["b2"])


def vit_forward(x, params, cfg):
    """Non-joint inference path of ViT.forward (joint=False, training=False)."""
    b = x.shape[0]
    patch, hidden = cfg["patch"], cfg["hidden"]
    p2 = patch * patch
    lead = 1 if cfg["is_cls_token"] else 0
    n_real = p2 + lead
    npad = -(-n_real // 16) * 16          # pad tokens to a multiple of 16 (bf16 sublane tile)

    tokens = to_words(x, patch)                               # (b, p2, f)
    # Row 0 is reserved for the CLS token (zeros: W@0 = 0, the CLS value comes from
    # the additive table); trailing zero rows are pad tokens, masked in attention.
    tokens = jnp.pad(tokens, ((0, 0), (lead, npad - n_real), (0, 0)))
    f = tokens.shape[-1]

    x2d = embed_tokens(tokens.reshape(b * npad, f), params["emb_w"],
                       params["emb_add"], npad)               # (b*npad, hidden)

    for p in params["enc"]:
        x2d = encoder_layer(x2d, p, cfg, npad, n_real)

    out = x2d.reshape(b, npad, hidden)
    out = out[:, 0] if cfg["is_cls_token"] else out[:, :p2].mean(axis=1)

    # final LayerNorm + classifier (output padded to 128 lanes, sliced back)
    logits = ln_linear(out, params["fc_ln_g"], params["fc_ln_b"],
                       params["fc_w"], params["fc_b"])
    return logits[:, :cfg["num_classes"]]


# --------------------------- deterministic params ----------------------------
def init_params(key, cfg):
    """Raw, torch-like parameters (weights stored pre-transposed as (in, out))."""
    hidden, mlp_hidden = cfg["hidden"], cfg["mlp_hidden"]
    f = (cfg["img_size"] // cfg["patch"]) ** 2 * cfg["in_c"]
    num_tokens = cfg["patch"] ** 2 + (1 if cfg["is_cls_token"] else 0)
    keys = iter(jax.random.split(key, 16 + 12 * cfg["num_layers"]))

    def dense(fan_in, fan_out):
        bound = 1.0 / math.sqrt(fan_in)   # torch.nn.Linear default U(-1/sqrt(in), 1/sqrt(in))
        w = jax.random.uniform(next(keys), (fan_in, fan_out), jnp.float32, -bound, bound)
        bb = jax.random.uniform(next(keys), (fan_out,), jnp.float32, -bound, bound)
        return w, bb

    raw = {}
    raw["emb_w"], raw["emb_b"] = dense(f, hidden)
    raw["cls_token"] = jax.random.normal(next(keys), (1, 1, hidden), jnp.float32)
    raw["pos_emb"] = jax.random.normal(next(keys), (1, num_tokens, hidden), jnp.float32)

    enc = []
    for _ in range(cfg["num_layers"]):
        p = {
            "la1_g": jnp.ones((hidden,), jnp.float32),
            "la1_b": jnp.zeros((hidden,), jnp.float32),
            "la2_g": jnp.ones((hidden,), jnp.float32),
            "la2_b": jnp.zeros((hidden,), jnp.float32),
        }
        p["wq"], p["bq"] = dense(hidden, hidden)
        p["wk"], p["bk"] = dense(hidden, hidden)
        p["wv"], p["bv"] = dense(hidden, hidden)
        p["wo"], p["bo"] = dense(hidden, hidden)
        p["w1"], p["b1"] = dense(hidden, mlp_hidden)
        p["w2"], p["b2"] = dense(mlp_hidden, hidden)
        enc.append(p)
    raw["enc"] = enc

    raw["fc_ln_g"] = jnp.ones((hidden,), jnp.float32)
    raw["fc_ln_b"] = jnp.zeros((hidden,), jnp.float32)
    raw["fc_w"], raw["fc_b"] = dense(hidden, cfg["num_classes"])
    return raw


def prepare_params(raw, cfg):
    """Rearrange raw params for the fused kernels:
       * Q/K/V concatenated into one (H, 3H) matrix; the reference's 1/sqrt(hidden)
         score scale folded into the Q weights/bias.
       * embedding bias, CLS token and positional embedding folded into a single
         additive table aligned with the padded token axis.
       * MXU-side weights cast to bfloat16 (accumulation stays f32 in-kernel).
       * biases / LN params stored as (1, N) rows (lane broadcast).
       * classifier weights padded to 128 output lanes (sliced back after)."""
    hidden = cfg["hidden"]
    p2 = cfg["patch"] ** 2
    lead = 1 if cfg["is_cls_token"] else 0
    n_real = p2 + lead
    npad = -(-n_real // 16) * 16
    scale = 1.0 / math.sqrt(hidden)       # NOTE: reference scales by 1/sqrt(feats), not head_dim
    row = lambda v: v.reshape(1, -1).astype(jnp.float32)
    bf16 = lambda w: w.astype(jnp.bfloat16)

    pos = raw["pos_emb"].reshape(n_real, hidden).astype(jnp.float32)
    add = jnp.zeros((npad, hidden), jnp.float32)
    if cfg["is_cls_token"]:
        add = add.at[0].set(raw["cls_token"].reshape(hidden) + pos[0])
        add = add.at[1:n_real].set(pos[1:] + raw["emb_b"][None, :])
    else:
        add = add.at[0:n_real].set(pos + raw["emb_b"][None, :])

    prep = {
        "emb_w": bf16(raw["emb_w"]),
        "emb_add": add,
        "fc_ln_g": row(raw["fc_ln_g"]), "fc_ln_b": row(raw["fc_ln_b"]),
    }
    nc = cfg["num_classes"]
    ncp = -(-nc // 128) * 128
    prep["fc_w"] = bf16(jnp.pad(raw["fc_w"], ((0, 0), (0, ncp - nc))))
    prep["fc_b"] = row(jnp.pad(raw["fc_b"], (0, ncp - nc)))

    enc = []
    for p in raw["enc"]:
        enc.append({
            "la1_g": row(p["la1_g"]), "la1_b": row(p["la1_b"]),
            "la2_g": row(p["la2_g"]), "la2_b": row(p["la2_b"]),
            "w_qkv": bf16(jnp.concatenate([p["wq"] * scale, p["wk"], p["wv"]], axis=1)),
            "b_qkv": row(jnp.concatenate([p["bq"] * scale, p["bk"], p["bv"]])),
            "wo": bf16(p["wo"]), "bo": row(p["bo"]),
            "w1": bf16(p["w1"]), "b1": row(p["b1"]),
            "w2": bf16(p["w2"]), "b2": row(p["b2"]),
        })
    prep["enc"] = enc
    return prep


# ----------------------------------- main ------------------------------------
if __name__ == "__main__":
    # small config consistent with the module's constructor
    cfg = dict(
        in_c=3, num_classes=10, img_size=16, patch=4,
        num_layers=2, hidden=64, mlp_hidden=128, head=4, is_cls_token=True,
    )

    key = jax.random.PRNGKey(0)
    kx, kp = jax.random.split(key)
    x = jax.random.normal(kx, (2, cfg["in_c"], cfg["img_size"], cfg["img_size"]), jnp.float32)
    params = prepare_params(init_params(kp, cfg), cfg)

    fwd = jax.jit(functools.partial(vit_forward, cfg=cfg))
    logits = fwd(x, params)
    jax.block_until_ready(logits)

    assert logits.shape == (2, cfg["num_classes"]), logits.shape
    assert bool(jnp.all(jnp.isfinite(logits)))
    print("KERNEL_OK")
</pallas_src>

<mosaic_0001>
module attributes {stable_mosaic.version = 11 : i64} {
  func.func @_ln_linear_kernel(%arg0: i32, %arg1: memref<2x64xf32, #tpu.memory_space<vmem>>, %arg2: memref<1x64xf32, #tpu.memory_space<vmem>>, %arg3: memref<1x64xf32, #tpu.memory_space<vmem>>, %arg4: memref<64x128xbf16, #tpu.memory_space<vmem>>, %arg5: memref<1x128xf32, #tpu.memory_space<vmem>>, %arg6: memref<2x128xf32, #tpu.memory_space<vmem>>) attributes {dimension_semantics = [#tpu.dimension_semantics<parallel>], iteration_bounds = array<i64: 1>, scalar_prefetch = 0 : i64, scratch_operands = 0 : i64, tpu.core_type = #tpu.core_type<tc>, window_params = [{transform_indices = @transform_0, window_bounds = array<i64: 2, 64>}, {pipeline_mode = #tpu.pipeline_mode<synchronous>, transform_indices = @transform_1, window_bounds = array<i64: 1, 64>}, {pipeline_mode = #tpu.pipeline_mode<synchronous>, transform_indices = @transform_2, window_bounds = array<i64: 1, 64>}, {pipeline_mode = #tpu.pipeline_mode<synchronous>, transform_indices = @transform_3, window_bounds = array<i64: 64, 128>}, {pipeline_mode = #tpu.pipeline_mode<synchronous>, transform_indices = @transform_4, window_bounds = array<i64: 1, 128>}, {transform_indices = @transform_5, window_bounds = array<i64: 2, 128>}]} {
    %c0 = arith.constant 0 : index
    %c0_0 = arith.constant 0 : index
    %0 = vector.load %arg1[%c0, %c0_0] : memref<2x64xf32, #tpu.memory_space<vmem>>, vector<2x64xf32>
    %c0_1 = arith.constant 0 : index
    %c0_2 = arith.constant 0 : index
    %1 = vector.load %arg2[%c0_1, %c0_2] : memref<1x64xf32, #tpu.memory_space<vmem>>, vector<1x64xf32>
    %c0_3 = arith.constant 0 : index
    %c0_4 = arith.constant 0 : index
    %2 = vector.load %arg3[%c0_3, %c0_4] : memref<1x64xf32, #tpu.memory_space<vmem>>, vector<1x64xf32>
    %cst = arith.constant dense<0.000000e+00> : vector<2xf32>
    %3 = vector.multi_reduction <add>, %0, %cst [1] : vector<2x64xf32> to vector<2xf32>
    %4 = vector.shape_cast %3 : vector<2xf32> to vector<2x1xf32>
    %cst_5 = arith.constant 6.400000e+01 : f32
    %5 = vector.broadcast %cst_5 : f32 to vector<2x1xf32>
    %6 = arith.divf %4, %5 : vector<2x1xf32>
    %7 = vector.broadcast %6 : vector<2x1xf32> to vector<2x64xf32>
    %8 = arith.subf %0, %7 : vector<2x64xf32>
    %9 = arith.mulf %8, %8 : vector<2x64xf32>
    %cst_6 = arith.constant dense<0.000000e+00> : vector<2xf32>
    %10 = vector.multi_reduction <add>, %9, %cst_6 [1] : vector<2x64xf32> to vector<2xf32>
    %11 = vector.shape_cast %10 : vector<2xf32> to vector<2x1xf32>
    %cst_7 = arith.constant 6.400000e+01 : f32
    %12 = vector.broadcast %cst_7 : f32 to vector<2x1xf32>
    %13 = arith.divf %11, %12 : vector<2x1xf32>
    %14 = vector.broadcast %6 : vector<2x1xf32> to vector<2x64xf32>
    %15 = arith.subf %0, %14 : vector<2x64xf32>
    %cst_8 = arith.constant 9.99999974E-6 : f32
    %16 = vector.broadcast %cst_8 : f32 to vector<2x1xf32>
    %17 = arith.addf %13, %16 : vector<2x1xf32>
    %18 = math.rsqrt %17 : vector<2x1xf32>
    %19 = vector.broadcast %18 : vector<2x1xf32> to vector<2x64xf32>
    %20 = arith.mulf %15, %19 : vector<2x64xf32>
    %21 = vector.broadcast %1 : vector<1x64xf32> to vector<2x64xf32>
    %22 = arith.mulf %20, %21 : vector<2x64xf32>
    %23 = vector.broadcast %2 : vector<1x64xf32> to vector<2x64xf32>
    %24 = arith.addf %22, %23 : vector<2x64xf32>
    %25 = arith.truncf %24 : vector<2x64xf32> to vector<2x64xbf16>
    %c0_9 = arith.constant 0 : index
    %c0_10 = arith.constant 0 : index
    %26 = vector.load %arg4[%c0_9, %c0_10] : memref<64x128xbf16, #tpu.memory_space<vmem>>, vector<64x128xbf16>
    %cst_11 = arith.constant dense<0.000000e+00> : vector<2x128xf32>
    %27 = tpu.matmul %25, %26, %cst_11 {dimension_numbers = #tpu.dot_dimension_numbers<[1], [0], [0], [1], [0, 0, 1, 1], [], []>} : vector<2x64xbf16>, vector<64x128xbf16>, vector<2x128xf32> -> vector<2x128xf32>
    %c0_12 = arith.constant 0 : index
    %c0_13 = arith.constant 0 : index
    %28 = vector.load %arg5[%c0_12, %c0_13] : memref<1x128xf32, #tpu.memory_space<vmem>>, vector<1x128xf32>
    %29 = vector.broadcast %28 : vector<1x128xf32> to vector<2x128xf32>
    %30 = arith.addf %27, %29 : vector<2x128xf32>
    %c0_14 = arith.constant 0 : index
    %c0_15 = arith.constant 0 : index
    %31 = vector.load %arg6[%c0_14, %c0_15] : memref<2x128xf32, #tpu.memory_space<vmem>>, vector<2x128xf32>
    tpu.vector_store %arg6[%c0_14, %c0_15], %30 {strides = array<i32>} : memref<2x128xf32, #tpu.memory_space<vmem>>, vector<2x128xf32>,
    return
  }
  func.func @transform_0(%arg0: i32) -> (i32, i32) {
    %c0_i32 = arith.constant 0 : i32
    %c0_i32_0 = arith.constant 0 : i32
    return %arg0, %c0_i32 : i32, i32
  }
  func.func @transform_1(%arg0: i32) -> (i32, i32) {
    %c0_i32 = arith.constant 0 : i32
    %c0_i32_0 = arith.constant 0 : i32
    %c0_i32_1 = arith.constant 0 : i32
    return %c0_i32, %c0_i32_0 : i32, i32
  }
  func.func @transform_2(%arg0: i32) -> (i32, i32) {
    %c0_i32 = arith.constant 0 : i32
    %c0_i32_0 = arith.constant 0 : i32
    %c0_i32_1 = arith.constant 0 : i32
    return %c0_i32, %c0_i32_0 : i32, i32
  }
  func.func @transform_3(%arg0: i32) -> (i32, i32) {
    %c0_i32 = arith.constant 0 : i32
    %c0_i32_0 = arith.constant 0 : i32
    %c0_i32_1 = arith.constant 0 : i32
    return %c0_i32, %c0_i32_0 : i32, i32
  }
  func.func @transform_4(%arg0: i32) -> (i32, i32) {
    %c0_i32 = arith.constant 0 : i32
    %c0_i32_0 = arith.constant 0 : i32
    %c0_i32_1 = arith.constant 0 : i32
    return %c0_i32, %c0_i32_0 : i32, i32
  }
  func.func @transform_5(%arg0: i32) -> (i32, i32) {
    %c0_i32 = arith.constant 0 : i32
    %c0_i32_0 = arith.constant 0 : i32
    return %arg0, %c0_i32 : i32, i32
  }
}

module attributes {stable_mosaic.version = 11 : i64} {
  func.func @_embed_kernel(%arg0: i32, %arg1: memref<32x48xf32, #tpu.memory_space<vmem>>, %arg2: memref<48x64xbf16, #tpu.memory_space<vmem>>, %arg3: memref<32x64xf32, #tpu.memory_space<vmem>>, %arg4: memref<32x64xf32, #tpu.memory_space<vmem>>) attributes {dimension_semantics = [#tpu.dimension_semantics<parallel>], iteration_bounds = array<i64: 2>, scalar_prefetch = 0 : i64, scratch_operands = 0 : i64, tpu.core_type = #tpu.core_type<tc>, window_params = [{transform_indices = @transform_0, window_bounds = array<i64: 32, 48>}, {pipeline_mode = #tpu.pipeline_mode<synchronous>, transform_indices = @transform_1, window_bounds = array<i64: 48, 64>}, {pipeline_mode = #tpu.pipeline_mode<synchronous>, transform_indices = @transform_2, window_bounds = array<i64: 32, 64>}, {transform_indices = @transform_3, window_bounds = array<i64: 32, 64>}]} {
    %c0 = arith.constant 0 : index
    %c0_0 = arith.constant 0 : index
    %0 = vector.load %arg1[%c0, %c0_0] : memref<32x48xf32, #tpu.memory_space<vmem>>, vector<32x48xf32>
    %1 = arith.truncf %0 : vector<32x48xf32> to vector<32x48xbf16>
    %c0_1 = arith.constant 0 : index
    %c0_2 = arith.constant 0 : index
    %2 = vector.load %arg2[%c0_1, %c0_2] : memref<48x64xbf16, #tpu.memory_space<vmem>>, vector<48x64xbf16>
    %cst = arith.constant dense<0.000000e+00> : vector<32x64xf32>
    %3 = tpu.matmul %1, %2, %cst {dimension_numbers = #tpu.dot_dimension_numbers<[1], [0], [0], [1], [0, 0, 1, 1], [], []>} : vector<32x48xbf16>, vector<48x64xbf16>, vector<32x64xf32> -> vector<32x64xf32>
    %c0_3 = arith.constant 0 : index
    %c0_4 = arith.constant 0 : index
    %4 = vector.load %arg3[%c0_3, %c0_4] : memref<32x64xf32, #tpu.memory_space<vmem>>, vector<32x64xf32>
    %5 = arith.addf %3, %4 : vector<32x64xf32>
    %c0_5 = arith.constant 0 : index
    %c0_6 = arith.constant 0 : index
    %6 = vector.load %arg4[%c0_5, %c0_6] : memref<32x64xf32, #tpu.memory_space<vmem>>, vector<32x64xf32>
    tpu.vector_store %arg4[%c0_5, %c0_6], %5 {strides = array<i32>} : memref<32x64xf32, #tpu.memory_space<vmem>>, vector<32x64xf32>,
    return
  }
  func.func @transform_0(%arg0: i32) -> (i32, i32) {
    %c0_i32 = arith.constant 0 : i32
    %c0_i32_0 = arith.constant 0 : i32
    return %arg0, %c0_i32 : i32, i32
  }
  func.func @transform_1(%arg0: i32) -> (i32, i32) {
    %c0_i32 = arith.constant 0 : i32
    %c0_i32_0 = arith.constant 0 : i32
    %c0_i32_1 = arith.constant 0 : i32
    return %c0_i32, %c0_i32_0 : i32, i32
  }
  func.func @transform_2(%arg0: i32) -> (i32, i32) {
    %c0_i32 = arith.constant 0 : i32
    %c0_i32_0 = arith.constant 0 : i32
    %c0_i32_1 = arith.constant 0 : i32
    return %c0_i32, %c0_i32_0 : i32, i32
  }
  func.func @transform_3(%arg0: i32) -> (i32, i32) {
    %c0_i32 = arith.constant 0 : i32
    %c0_i32_0 = arith.constant 0 : i32
    return %arg0, %c0_i32 : i32, i32
  }
}

module attributes {stable_mosaic.version = 11 : i64} {
  func.func @_attn_block_kernel(%arg0: i32, %arg1: memref<32x64xf32, #tpu.memory_space<vmem>>, %arg2: memref<1x64xf32, #tpu.memory_space<vmem>>, %arg3: memref<1x64xf32, #tpu.memory_space<vmem>>, %arg4: memref<64x192xbf16, #tpu.memory_space<vmem>>, %arg5: memref<1x192xf32, #tpu.memory_space<vmem>>, %arg6: memref<64x64xbf16, #tpu.memory_space<vmem>>, %arg7: memref<1x64xf32, #tpu.memory_space<vmem>>, %arg8: memref<32x64xf32, #tpu.memory_space<vmem>>) attributes {dimension_semantics = [#tpu.dimension_semantics<parallel>], iteration_bounds = array<i64: 2>, scalar_prefetch = 0 : i64, scratch_operands = 0 : i64, tpu.core_type = #tpu.core_type<tc>, window_params = [{transform_indices = @transform_0, window_bounds = array<i64: 32, 64>}, {pipeline_mode = #tpu.pipeline_mode<synchronous>, transform_indices = @transform_1, window_bounds = array<i64: 1, 64>}, {pipeline_mode = #tpu.pipeline_mode<synchronous>, transform_indices = @transform_2, window_bounds = array<i64: 1, 64>}, {pipeline_mode = #tpu.pipeline_mode<synchronous>, transform_indices = @transform_3, window_bounds = array<i64: 64, 192>}, {pipeline_mode = #tpu.pipeline_mode<synchronous>, transform_indices = @transform_4, window_bounds = array<i64: 1, 192>}, {pipeline_mode = #tpu.pipeline_mode<synchronous>, transform_indices = @transform_5, window_bounds = array<i64: 64, 64>}, {pipeline_mode = #tpu.pipeline_mode<synchronous>, transform_indices = @transform_6, window_bounds = array<i64: 1, 64>}, {transform_indices = @transform_7, window_bounds = array<i64: 32, 64>}]} {
    %c0 = arith.constant 0 : index
    %c0_0 = arith.constant 0 : index
    %0 = vector.load %arg1[%c0, %c0_0] : memref<32x64xf32, #tpu.memory_space<vmem>>, vector<32x64xf32>
    %c0_1 = arith.constant 0 : index
    %c0_2 = arith.constant 0 : index
    %1 = vector.load %arg2[%c0_1, %c0_2] : memref<1x64xf32, #tpu.memory_space<vmem>>, vector<1x64xf32>
    %c0_3 = arith.constant 0 : index
    %c0_4 = arith.constant 0 : index
    %2 = vector.load %arg3[%c0_3, %c0_4] : memref<1x64xf32, #tpu.memory_space<vmem>>, vector<1x64xf32>
    %cst = arith.constant dense<0.000000e+00> : vector<32xf32>
    %3 = vector.multi_reduction <add>, %0, %cst [1] : vector<32x64xf32> to vector<32xf32>
    %4 = vector.shape_cast %3 : vector<32xf32> to vector<32x1xf32>
    %cst_5 = arith.constant 6.400000e+01 : f32
    %5 = vector.broadcast %cst_5 : f32 to vector<32x1xf32>
    %6 = arith.divf %4, %5 : vector<32x1xf32>
    %7 = vector.broadcast %6 : vector<32x1xf32> to vector<32x64xf32>
    %8 = arith.subf %0, %7 : vector<32x64xf32>
    %9 = arith.mulf %8, %8 : vector<32x64xf32>
    %cst_6 = arith.constant dense<0.000000e+00> : vector<32xf32>
    %10 = vector.multi_reduction <add>, %9, %cst_6 [1] : vector<32x64xf32> to vector<32xf32>
    %11 = vector.shape_cast %10 : vector<32xf32> to vector<32x1xf32>
    %cst_7 = arith.constant 6.400000e+01 : f32
    %12 = vector.broadcast %cst_7 : f32 to vector<32x1xf32>
    %13 = arith.divf %11, %12 : vector<32x1xf32>
    %14 = vector.broadcast %6 : vector<32x1xf32> to vector<32x64xf32>
    %15 = arith.subf %0, %14 : vector<32x64xf32>
    %cst_8 = arith.constant 9.99999974E-6 : f32
    %16 = vector.broadcast %cst_8 : f32 to vector<32x1xf32>
    %17 = arith.addf %13, %16 : vector<32x1xf32>
    %18 = math.rsqrt %17 : vector<32x1xf32>
    %19 = vector.broadcast %18 : vector<32x1xf32> to vector<32x64xf32>
    %20 = arith.mulf %15, %19 : vector<32x64xf32>
    %21 = vector.broadcast %1 : vector<1x64xf32> to vector<32x64xf32>
    %22 = arith.mulf %20, %21 : vector<32x64xf32>
    %23 = vector.broadcast %2 : vector<1x64xf32> to vector<32x64xf32>
    %24 = arith.addf %22, %23 : vector<32x64xf32>
    %25 = arith.truncf %24 : vector<32x64xf32> to vector<32x64xbf16>
    %c0_9 = arith.constant 0 : index
    %c0_10 = arith.constant 0 : index
    %26 = vector.load %arg4[%c0_9, %c0_10] : memref<64x192xbf16, #tpu.memory_space<vmem>>, vector<64x192xbf16>
    %cst_11 = arith.constant dense<0.000000e+00> : vector<32x192xf32>
    %27 = tpu.matmul %25, %26, %cst_11 {dimension_numbers = #tpu.dot_dimension_numbers<[1], [0], [0], [1], [0, 0, 1, 1], [], []>} : vector<32x64xbf16>, vector<64x192xbf16>, vector<32x192xf32> -> vector<32x192xf32>
    %c0_12 = arith.constant 0 : index
    %c0_13 = arith.constant 0 : index
    %28 = vector.load %arg5[%c0_12, %c0_13] : memref<1x192xf32, #tpu.memory_space<vmem>>, vector<1x192xf32>
    %29 = vector.broadcast %28 : vector<1x192xf32> to vector<32x192xf32>
    %30 = arith.addf %27, %29 : vector<32x192xf32>
    %31 = tpu.iota {dimensions = array<i32: 1>} : vector<1x32xi32>
    %c17_i32 = arith.constant 17 : i32
    %32 = vector.broadcast %c17_i32 : i32 to vector<1x32xi32>
    %33 = arith.cmpi slt, %31, %32 : vector<1x32xi32>
    %cst_14 = arith.constant 0.000000e+00 : f32
    %cst_15 = arith.constant -1.000000e+30 : f32
    %34 = vector.broadcast %cst_14 : f32 to vector<1x32xf32>
    %35 = vector.broadcast %cst_15 : f32 to vector<1x32xf32>
    %36 = arith.select %33, %34, %35 : vector<1x32xi1>, vector<1x32xf32>
    %37 = vector.extract_strided_slice %30 {offsets = [0, 0], sizes = [32, 16], strides = [1, 1]} : vector<32x192xf32> to vector<32x16xf32>
    %38 = arith.truncf %37 : vector<32x16xf32> to vector<32x16xbf16>
    %39 = vector.extract_strided_slice %30 {offsets = [0, 64], sizes = [32, 16], strides = [1, 1]} : vector<32x192xf32> to vector<32x16xf32>
    %40 = arith.truncf %39 : vector<32x16xf32> to vector<32x16xbf16>
    %41 = vector.extract_strided_slice %30 {offsets = [0, 128], sizes = [32, 16], strides = [1, 1]} : vector<32x192xf32> to vector<32x16xf32>
    %42 = arith.truncf %41 : vector<32x16xf32> to vector<32x16xbf16>
    %cst_16 = arith.constant dense<0.000000e+00> : vector<32x32xf32>
    %43 = tpu.matmul %38, %40, %cst_16 {dimension_numbers = #tpu.dot_dimension_numbers<[1], [1], [0], [0], [0, 0, 1, 0], [], []>} : vector<32x16xbf16>, vector<32x16xbf16>, vector<32x32xf32> -> vector<32x32xf32>
    %44 = vector.broadcast %36 : vector<1x32xf32> to vector<32x32xf32>
    %45 = arith.addf %43, %44 : vector<32x32xf32>
    %cst_17 = arith.constant dense<0xFF800000> : vector<32xf32>
    %46 = vector.multi_reduction <maximumf>, %45, %cst_17 [1] : vector<32x32xf32> to vector<32xf32>
    %47 = vector.shape_cast %46 : vector<32xf32> to vector<32x1xf32>
    %48 = vector.broadcast %47 : vector<32x1xf32> to vector<32x32xf32>
    %49 = arith.subf %45, %48 : vector<32x32xf32>
    %50 = math.exp %49 : vector<32x32xf32>
    %cst_18 = arith.constant dense<0.000000e+00> : vector<32xf32>
    %51 = vector.multi_reduction <add>, %50, %cst_18 [1] : vector<32x32xf32> to vector<32xf32>
    %52 = vector.shape_cast %51 : vector<32xf32> to vector<32x1xf32>
    %53 = tpu.reciprocal %52 {approx = true} : vector<32x1xf32> -> vector<32x1xf32>
    %54 = vector.broadcast %53 : vector<32x1xf32> to vector<32x32xf32>
    %55 = arith.mulf %50, %54 : vector<32x32xf32>
    %56 = arith.truncf %55 : vector<32x32xf32> to vector<32x32xbf16>
    %cst_19 = arith.constant dense<0.000000e+00> : vector<32x16xf32>
    %57 = tpu.matmul %56, %42, %cst_19 {dimension_numbers = #tpu.dot_dimension_numbers<[1], [0], [0], [1], [0, 0, 1, 1], [], []>} : vector<32x32xbf16>, vector<32x16xbf16>, vector<32x16xf32> -> vector<32x16xf32>
    %58 = vector.extract_strided_slice %30 {offsets = [0, 16], sizes = [32, 16], strides = [1, 1]} : vector<32x192xf32> to vector<32x16xf32>
    %59 = arith.truncf %58 : vector<32x16xf32> to vector<32x16xbf16>
    %60 = vector.extract_strided_slice %30 {offsets = [0, 80], sizes = [32, 16], strides = [1, 1]} : vector<32x192xf32> to vector<32x16xf32>
    %61 = arith.truncf %60 : vector<32x16xf32> to vector<32x16xbf16>
    %62 = vector.extract_strided_slice %30 {offsets = [0, 144], sizes = [32, 16], strides = [1, 1]} : vector<32x192xf32> to vector<32x16xf32>
    %63 = arith.truncf %62 : vector<32x16xf32> to vector<32x16xbf16>
    %cst_20 = arith.constant dense<0.000000e+00> : vector<32x32xf32>
    %64 = tpu.matmul %59, %61, %cst_20 {dimension_numbers = #tpu.dot_dimension_numbers<[1], [1], [0], [0], [0, 0, 1, 0], [], []>} : vector<32x16xbf16>, vector<32x16xbf16>, vector<32x32xf32> -> vector<32x32xf32>
    %65 = vector.broadcast %36 : vector<1x32xf32> to vector<32x32xf32>
    %66 = arith.addf %64, %65 : vector<32x32xf32>
    %cst_21 = arith.constant dense<0xFF800000> : vector<32xf32>
    %67 = vector.multi_reduction <maximumf>, %66, %cst_21 [1] : vector<32x32xf32> to vector<32xf32>
    %68 = vector.shape_cast %67 : vector<32xf32> to vector<32x1xf32>
    %69 = vector.broadcast %68 : vector<32x1xf32> to vector<32x32xf32>
    %70 = arith.subf %66, %69 : vector<32x32xf32>
    %71 = math.exp %70 : vector<32x32xf32>
    %cst_22 = arith.constant dense<0.000000e+00> : vector<32xf32>
    %72 = vector.multi_reduction <add>, %71, %cst_22 [1] : vector<32x32xf32> to vector<32xf32>
    %73 = vector.shape_cast %72 : vector<32xf32> to vector<32x1xf32>
    %74 = tpu.reciprocal %73 {approx = true} : vector<32x1xf32> -> vector<32x1xf32>
    %75 = vector.broadcast %74 : vector<32x1xf32> to vector<32x32xf32>
    %76 = arith.mulf %71, %75 : vector<32x32xf32>
    %77 = arith.truncf %76 : vector<32x32xf32> to vector<32x32xbf16>
    %cst_23 = arith.constant dense<0.000000e+00> : vector<32x16xf32>
    %78 = tpu.matmul %77, %63, %cst_23 {dimension_numbers = #tpu.dot_dimension_numbers<[1], [0], [0], [1], [0, 0, 1, 1], [], []>} : vector<32x32xbf16>, vector<32x16xbf16>, vector<32x16xf32> -> vector<32x16xf32>
    %79 = vector.extract_strided_slice %30 {offsets = [0, 32], sizes = [32, 16], strides = [1, 1]} : vector<32x192xf32> to vector<32x16xf32>
    %80 = arith.truncf %79 : vector<32x16xf32> to vector<32x16xbf16>
    %81 = vector.extract_strided_slice %30 {offsets = [0, 96], sizes = [32, 16], strides = [1, 1]} : vector<32x192xf32> to vector<32x16xf32>
    %82 = arith.truncf %81 : vector<32x16xf32> to vector<32x16xbf16>
    %83 = vector.extract_strided_slice %30 {offsets = [0, 160], sizes = [32, 16], strides = [1, 1]} : vector<32x192xf32> to vector<32x16xf32>
    %84 = arith.truncf %83 : vector<32x16xf32> to vector<32x16xbf16>
    %cst_24 = arith.constant dense<0.000000e+00> : vector<32x32xf32>
    %85 = tpu.matmul %80, %82, %cst_24 {dimension_numbers = #tpu.dot_dimension_numbers<[1], [1], [0], [0], [0, 0, 1, 0], [], []>} : vector<32x16xbf16>, vector<32x16xbf16>, vector<32x32xf32> -> vector<32x32xf32>
    %86 = vector.broadcast %36 : vector<1x32xf32> to vector<32x32xf32>
    %87 = arith.addf %85, %86 : vector<32x32xf32>
    %cst_25 = arith.constant dense<0xFF800000> : vector<32xf32>
    %88 = vector.multi_reduction <maximumf>, %87, %cst_25 [1] : vector<32x32xf32> to vector<32xf32>
    %89 = vector.shape_cast %88 : vector<32xf32> to vector<32x1xf32>
    %90 = vector.broadcast %89 : vector<32x1xf32> to vector<32x32xf32>
    %91 = arith.subf %87, %90 : vector<32x32xf32>
    %92 = math.exp %91 : vector<32x32xf32>
    %cst_26 = arith.constant dense<0.000000e+00> : vector<32xf32>
    %93 = vector.multi_reduction <add>, %92, %cst_26 [1] : vector<32x32xf32> to vector<32xf32>
    %94 = vector.shape_cast %93 : vector<32xf32> to vector<32x1xf32>
    %95 = tpu.reciprocal %94 {approx = true} : vector<32x1xf32> -> vector<32x1xf32>
    %96 = vector.broadcast %95 : vector<32x1xf32> to vector<32x32xf32>
    %97 = arith.mulf %92, %96 : vector<32x32xf32>
    %98 = arith.truncf %97 : vector<32x32xf32> to vector<32x32xbf16>
    %cst_27 = arith.constant dense<0.000000e+00> : vector<32x16xf32>
    %99 = tpu.matmul %98, %84, %cst_27 {dimension_numbers = #tpu.dot_dimension_numbers<[1], [0], [0], [1], [0, 0, 1, 1], [], []>} : vector<32x32xbf16>, vector<32x16xbf16>, vector<32x16xf32> -> vector<32x16xf32>
    %100 = vector.extract_strided_slice %30 {offsets = [0, 48], sizes = [32, 16], strides = [1, 1]} : vector<32x192xf32> to vector<32x16xf32>
    %101 = arith.truncf %100 : vector<32x16xf32> to vector<32x16xbf16>
    %102 = vector.extract_strided_slice %30 {offsets = [0, 112], sizes = [32, 16], strides = [1, 1]} : vector<32x192xf32> to vector<32x16xf32>
    %103 = arith.truncf %102 : vector<32x16xf32> to vector<32x16xbf16>
    %104 = vector.extract_strided_slice %30 {offsets = [0, 176], sizes = [32, 16], strides = [1, 1]} : vector<32x192xf32> to vector<32x16xf32>
    %105 = arith.truncf %104 : vector<32x16xf32> to vector<32x16xbf16>
    %cst_28 = arith.constant dense<0.000000e+00> : vector<32x32xf32>
    %106 = tpu.matmul %101, %103, %cst_28 {dimension_numbers = #tpu.dot_dimension_numbers<[1], [1], [0], [0], [0, 0, 1, 0], [], []>} : vector<32x16xbf16>, vector<32x16xbf16>, vector<32x32xf32> -> vector<32x32xf32>
    %107 = vector.broadcast %36 : vector<1x32xf32> to vector<32x32xf32>
    %108 = arith.addf %106, %107 : vector<32x32xf32>
    %cst_29 = arith.constant dense<0xFF800000> : vector<32xf32>
    %109 = vector.multi_reduction <maximumf>, %108, %cst_29 [1] : vector<32x32xf32> to vector<32xf32>
    %110 = vector.shape_cast %109 : vector<32xf32> to vector<32x1xf32>
    %111 = vector.broadcast %110 : vector<32x1xf32> to vector<32x32xf32>
    %112 = arith.subf %108, %111 : vector<32x32xf32>
    %113 = math.exp %112 : vector<32x32xf32>
    %cst_30 = arith.constant dense<0.000000e+00> : vector<32xf32>
    %114 = vector.multi_reduction <add>, %113, %cst_30 [1] : vector<32x32xf32> to vector<32xf32>
    %115 = vector.shape_cast %114 : vector<32xf32> to vector<32x1xf32>
    %116 = tpu.reciprocal %115 {approx = true} : vector<32x1xf32> -> vector<32x1xf32>
    %117 = vector.broadcast %116 : vector<32x1xf32> to vector<32x32xf32>
    %118 = arith.mulf %113, %117 : vector<32x32xf32>
    %119 = arith.truncf %118 : vector<32x32xf32> to vector<32x32xbf16>
    %cst_31 = arith.constant dense<0.000000e+00> : vector<32x16xf32>
    %120 = tpu.matmul %119, %105, %cst_31 {dimension_numbers = #tpu.dot_dimension_numbers<[1], [0], [0], [1], [0, 0, 1, 1], [], []>} : vector<32x32xbf16>, vector<32x16xbf16>, vector<32x16xf32> -> vector<32x16xf32>
    %121 = tpu.concatenate %57, %78, %99, %120 in 1 : vector<32x16xf32>, vector<32x16xf32>, vector<32x16xf32>, vector<32x16xf32> -> vector<32x64xf32>
    %122 = arith.truncf %121 : vector<32x64xf32> to vector<32x64xbf16>
    %c0_32 = arith.constant 0 : index
    %c0_33 = arith.constant 0 : index
    %123 = vector.load %arg6[%c0_32, %c0_33] : memref<64x64xbf16, #tpu.memory_space<vmem>>, vector<64x64xbf16>
    %cst_34 = arith.constant dense<0.000000e+00> : vector<32x64xf32>
    %124 = tpu.matmul %122, %123, %cst_34 {dimension_numbers = #tpu.dot_dimension_numbers<[1], [0], [0], [1], [0, 0, 1, 1], [], []>} : vector<32x64xbf16>, vector<64x64xbf16>, vector<32x64xf32> -> vector<32x64xf32>
    %c0_35 = arith.constant 0 : index
    %c0_36 = arith.constant 0 : index
    %125 = vector.load %arg7[%c0_35, %c0_36] : memref<1x64xf32, #tpu.memory_space<vmem>>, vector<1x64xf32>
    %126 = vector.broadcast %125 : vector<1x64xf32> to vector<32x64xf32>
    %127 = arith.addf %124, %126 : vector<32x64xf32>
    %128 = arith.addf %127, %0 : vector<32x64xf32>
    %c0_37 = arith.constant 0 : index
    %c0_38 = arith.constant 0 : index
    %129 = vector.load %arg8[%c0_37, %c0_38] : memref<32x64xf32, #tpu.memory_space<vmem>>, vector<32x64xf32>
    tpu.vector_store %arg8[%c0_37, %c0_38], %128 {strides = array<i32>} : memref<32x64xf32, #tpu.memory_space<vmem>>, vector<32x64xf32>,
    return
  }
  func.func @transform_0(%arg0: i32) -> (i32, i32) {
    %c0_i32 = arith.constant 0 : i32
    %c0_i32_0 = arith.constant 0 : i32
    return %arg0, %c0_i32 : i32, i32
  }
  func.func @transform_1(%arg0: i32) -> (i32, i32) {
    %c0_i32 = arith.constant 0 : i32
    %c0_i32_0 = arith.constant 0 : i32
    %c0_i32_1 = arith.constant 0 : i32
    return %c0_i32, %c0_i32_0 : i32, i32
  }
  func.func @transform_2(%arg0: i32) -> (i32, i32) {
    %c0_i32 = arith.constant 0 : i32
    %c0_i32_0 = arith.constant 0 : i32
    %c0_i32_1 = arith.constant 0 : i32
    return %c0_i32, %c0_i32_0 : i32, i32
  }
  func.func @transform_3(%arg0: i32) -> (i32, i32) {
    %c0_i32 = arith.constant 0 : i32
    %c0_i32_0 = arith.constant 0 : i32
    %c0_i32_1 = arith.constant 0 : i32
    return %c0_i32, %c0_i32_0 : i32, i32
  }
  func.func @transform_4(%arg0: i32) -> (i32, i32) {
    %c0_i32 = arith.constant 0 : i32
    %c0_i32_0 = arith.constant 0 : i32
    %c0_i32_1 = arith.constant 0 : i32
    return %c0_i32, %c0_i32_0 : i32, i32
  }
  func.func @transform_5(%arg0: i32) -> (i32, i32) {
    %c0_i32 = arith.constant 0 : i32
    %c0_i32_0 = arith.constant 0 : i32
    %c0_i32_1 = arith.constant 0 : i32
    return %c0_i32, %c0_i32_0 : i32, i32
  }
  func.func @transform_6(%arg0: i32) -> (i32, i32) {
    %c0_i32 = arith.constant 0 : i32
    %c0_i32_0 = arith.constant 0 : i32
    %c0_i32_1 = arith.constant 0 : i32
    return %c0_i32, %c0_i32_0 : i32, i32
  }
  func.func @transform_7(%arg0: i32) -> (i32, i32) {
    %c0_i32 = arith.constant 0 : i32
    %c0_i32_0 = arith.constant 0 : i32
    return %arg0, %c0_i32 : i32, i32
  }
}

module attributes {stable_mosaic.version = 11 : i64} {
  func.func @_ln_mlp_kernel(%arg0: i32, %arg1: memref<32x64xf32, #tpu.memory_space<vmem>>, %arg2: memref<1x64xf32, #tpu.memory_space<vmem>>, %arg3: memref<1x64xf32, #tpu.memory_space<vmem>>, %arg4: memref<64x128xbf16, #tpu.memory_space<vmem>>, %arg5: memref<1x128xf32, #tpu.memory_space<vmem>>, %arg6: memref<128x64xbf16, #tpu.memory_space<vmem>>, %arg7: memref<1x64xf32, #tpu.memory_space<vmem>>, %arg8: memref<32x64xf32, #tpu.memory_space<vmem>>) attributes {dimension_semantics = [#tpu.dimension_semantics<parallel>], iteration_bounds = array<i64: 2>, scalar_prefetch = 0 : i64, scratch_operands = 0 : i64, tpu.core_type = #tpu.core_type<tc>, window_params = [{transform_indices = @transform_0, window_bounds = array<i64: 32, 64>}, {pipeline_mode = #tpu.pipeline_mode<synchronous>, transform_indices = @transform_1, window_bounds = array<i64: 1, 64>}, {pipeline_mode = #tpu.pipeline_mode<synchronous>, transform_indices = @transform_2, window_bounds = array<i64: 1, 64>}, {pipeline_mode = #tpu.pipeline_mode<synchronous>, transform_indices = @transform_3, window_bounds = array<i64: 64, 128>}, {pipeline_mode = #tpu.pipeline_mode<synchronous>, transform_indices = @transform_4, window_bounds = array<i64: 1, 128>}, {pipeline_mode = #tpu.pipeline_mode<synchronous>, transform_indices = @transform_5, window_bounds = array<i64: 128, 64>}, {pipeline_mode = #tpu.pipeline_mode<synchronous>, transform_indices = @transform_6, window_bounds = array<i64: 1, 64>}, {transform_indices = @transform_7, window_bounds = array<i64: 32, 64>}]} {
    %c0 = arith.constant 0 : index
    %c0_0 = arith.constant 0 : index
    %0 = vector.load %arg1[%c0, %c0_0] : memref<32x64xf32, #tpu.memory_space<vmem>>, vector<32x64xf32>
    %c0_1 = arith.constant 0 : index
    %c0_2 = arith.constant 0 : index
    %1 = vector.load %arg2[%c0_1, %c0_2] : memref<1x64xf32, #tpu.memory_space<vmem>>, vector<1x64xf32>
    %c0_3 = arith.constant 0 : index
    %c0_4 = arith.constant 0 : index
    %2 = vector.load %arg3[%c0_3, %c0_4] : memref<1x64xf32, #tpu.memory_space<vmem>>, vector<1x64xf32>
    %cst = arith.constant dense<0.000000e+00> : vector<32xf32>
    %3 = vector.multi_reduction <add>, %0, %cst [1] : vector<32x64xf32> to vector<32xf32>
    %4 = vector.shape_cast %3 : vector<32xf32> to vector<32x1xf32>
    %cst_5 = arith.constant 6.400000e+01 : f32
    %5 = vector.broadcast %cst_5 : f32 to vector<32x1xf32>
    %6 = arith.divf %4, %5 : vector<32x1xf32>
    %7 = vector.broadcast %6 : vector<32x1xf32> to vector<32x64xf32>
    %8 = arith.subf %0, %7 : vector<32x64xf32>
    %9 = arith.mulf %8, %8 : vector<32x64xf32>
    %cst_6 = arith.constant dense<0.000000e+00> : vector<32xf32>
    %10 = vector.multi_reduction <add>, %9, %cst_6 [1] : vector<32x64xf32> to vector<32xf32>
    %11 = vector.shape_cast %10 : vector<32xf32> to vector<32x1xf32>
    %cst_7 = arith.constant 6.400000e+01 : f32
    %12 = vector.broadcast %cst_7 : f32 to vector<32x1xf32>
    %13 = arith.divf %11, %12 : vector<32x1xf32>
    %14 = vector.broadcast %6 : vector<32x1xf32> to vector<32x64xf32>
    %15 = arith.subf %0, %14 : vector<32x64xf32>
    %cst_8 = arith.constant 9.99999974E-6 : f32
    %16 = vector.broadcast %cst_8 : f32 to vector<32x1xf32>
    %17 = arith.addf %13, %16 : vector<32x1xf32>
    %18 = math.rsqrt %17 : vector<32x1xf32>
    %19 = vector.broadcast %18 : vector<32x1xf32> to vector<32x64xf32>
    %20 = arith.mulf %15, %19 : vector<32x64xf32>
    %21 = vector.broadcast %1 : vector<1x64xf32> to vector<32x64xf32>
    %22 = arith.mulf %20, %21 : vector<32x64xf32>
    %23 = vector.broadcast %2 : vector<1x64xf32> to vector<32x64xf32>
    %24 = arith.addf %22, %23 : vector<32x64xf32>
    %25 = arith.truncf %24 : vector<32x64xf32> to vector<32x64xbf16>
    %c0_9 = arith.constant 0 : index
    %c0_10 = arith.constant 0 : index
    %26 = vector.load %arg4[%c0_9, %c0_10] : memref<64x128xbf16, #tpu.memory_space<vmem>>, vector<64x128xbf16>
    %cst_11 = arith.constant dense<0.000000e+00> : vector<32x128xf32>
    %27 = tpu.matmul %25, %26, %cst_11 {dimension_numbers = #tpu.dot_dimension_numbers<[1], [0], [0], [1], [0, 0, 1, 1], [], []>} : vector<32x64xbf16>, vector<64x128xbf16>, vector<32x128xf32> -> vector<32x128xf32>
    %c0_12 = arith.constant 0 : index
    %c0_13 = arith.constant 0 : index
    %28 = vector.load %arg5[%c0_12, %c0_13] : memref<1x128xf32, #tpu.memory_space<vmem>>, vector<1x128xf32>
    %29 = vector.broadcast %28 : vector<1x128xf32> to vector<32x128xf32>
    %30 = arith.addf %27, %29 : vector<32x128xf32>
    %cst_14 = arith.constant 5.000000e-01 : f32
    %31 = vector.broadcast %cst_14 : f32 to vector<32x128xf32>
    %32 = arith.mulf %31, %30 : vector<32x128xf32>
    %cst_15 = arith.constant 0.707106769 : f32
    %33 = vector.broadcast %cst_15 : f32 to vector<32x128xf32>
    %34 = arith.mulf %30, %33 : vector<32x128xf32>
    %35 = math.absf %34 : vector<32x128xf32>
    %cst_16 = arith.constant 0.327591091 : f32
    %36 = vector.broadcast %cst_16 : f32 to vector<32x128xf32>
    %37 = arith.mulf %36, %35 : vector<32x128xf32>
    %cst_17 = arith.constant 1.000000e+00 : f32
    %38 = vector.broadcast %cst_17 : f32 to vector<32x128xf32>
    %39 = arith.addf %38, %37 : vector<32x128xf32>
    %cst_18 = arith.constant 1.000000e+00 : f32
    %40 = vector.broadcast %cst_18 : f32 to vector<32x128xf32>
    %41 = arith.divf %40, %39 : vector<32x128xf32>
    %cst_19 = arith.constant 1.06140542 : f32
    %42 = vector.broadcast %cst_19 : f32 to vector<32x128xf32>
    %43 = arith.mulf %42, %41 : vector<32x128xf32>
    %cst_20 = arith.constant -1.45315206 : f32
    %44 = vector.broadcast %cst_20 : f32 to vector<32x128xf32>
    %45 = arith.addf %43, %44 : vector<32x128xf32>
    %46 = arith.mulf %45, %41 : vector<32x128xf32>
    %cst_21 = arith.constant 1.42141378 : f32
    %47 = vector.broadcast %cst_21 : f32 to vector<32x128xf32>
    %48 = arith.addf %46, %47 : vector<32x128xf32>
    %49 = arith.mulf %48, %41 : vector<32x128xf32>
    %cst_22 = arith.constant -0.284496725 : f32
    %50 = vector.broadcast %cst_22 : f32 to vector<32x128xf32>
    %51 = arith.addf %49, %50 : vector<32x128xf32>
    %52 = arith.mulf %51, %41 : vector<32x128xf32>
    %cst_23 = arith.constant 0.254829586 : f32
    %53 = vector.broadcast %cst_23 : f32 to vector<32x128xf32>
    %54 = arith.addf %52, %53 : vector<32x128xf32>
    %55 = arith.mulf %54, %41 : vector<32x128xf32>
    %cst_24 = arith.constant 0.000000e+00 : f32
    %56 = vector.broadcast %cst_24 : f32 to vector<32x128xf32>
    %57 = arith.subf %56, %35 : vector<32x128xf32>
    %58 = arith.mulf %57, %35 : vector<32x128xf32>
    %59 = math.exp %58 : vector<32x128xf32>
    %60 = arith.mulf %55, %59 : vector<32x128xf32>
    %cst_25 = arith.constant 1.000000e+00 : f32
    %61 = vector.broadcast %cst_25 : f32 to vector<32x128xf32>
    %62 = arith.subf %61, %60 : vector<32x128xf32>
    %cst_26 = arith.constant 0.000000e+00 : f32
    %63 = vector.broadcast %cst_26 : f32 to vector<32x128xf32>
    %64 = arith.cmpf oge, %34, %63 : vector<32x128xf32>
    %cst_27 = arith.constant 0.000000e+00 : f32
    %65 = vector.broadcast %cst_27 : f32 to vector<32x128xf32>
    %66 = arith.subf %65, %62 : vector<32x128xf32>
    %67 = arith.select %64, %62, %66 : vector<32x128xi1>, vector<32x128xf32>
    %cst_28 = arith.constant 1.000000e+00 : f32
    %68 = vector.broadcast %cst_28 : f32 to vector<32x128xf32>
    %69 = arith.addf %68, %67 : vector<32x128xf32>
    %70 = arith.mulf %32, %69 : vector<32x128xf32>
    %71 = arith.truncf %70 : vector<32x128xf32> to vector<32x128xbf16>
    %c0_29 = arith.constant 0 : index
    %c0_30 = arith.constant 0 : index
    %72 = vector.load %arg6[%c0_29, %c0_30] : memref<128x64xbf16, #tpu.memory_space<vmem>>, vector<128x64xbf16>
    %cst_31 = arith.constant dense<0.000000e+00> : vector<32x64xf32>
    %73 = tpu.matmul %71, %72, %cst_31 {dimension_numbers = #tpu.dot_dimension_numbers<[1], [0], [0], [1], [0, 0, 1, 1], [], []>} : vector<32x128xbf16>, vector<128x64xbf16>, vector<32x64xf32> -> vector<32x64xf32>
    %c0_32 = arith.constant 0 : index
    %c0_33 = arith.constant 0 : index
    %74 = vector.load %arg7[%c0_32, %c0_33] : memref<1x64xf32, #tpu.memory_space<vmem>>, vector<1x64xf32>
    %75 = vector.broadcast %74 : vector<1x64xf32> to vector<32x64xf32>
    %76 = arith.addf %73, %75 : vector<32x64xf32>
    %cst_34 = arith.constant 5.000000e-01 : f32
    %77 = vector.broadcast %cst_34 : f32 to vector<32x64xf32>
    %78 = arith.mulf %77, %76 : vector<32x64xf32>
    %cst_35 = arith.constant 0.707106769 : f32
    %79 = vector.broadcast %cst_35 : f32 to vector<32x64xf32>
    %80 = arith.mulf %76, %79 : vector<32x64xf32>
    %81 = math.absf %80 : vector<32x64xf32>
    %cst_36 = arith.constant 0.327591091 : f32
    %82 = vector.broadcast %cst_36 : f32 to vector<32x64xf32>
    %83 = arith.mulf %82, %81 : vector<32x64xf32>
    %cst_37 = arith.constant 1.000000e+00 : f32
    %84 = vector.broadcast %cst_37 : f32 to vector<32x64xf32>
    %85 = arith.addf %84, %83 : vector<32x64xf32>
    %cst_38 = arith.constant 1.000000e+00 : f32
    %86 = vector.broadcast %cst_38 : f32 to vector<32x64xf32>
    %87 = arith.divf %86, %85 : vector<32x64xf32>
    %cst_39 = arith.constant 1.06140542 : f32
    %88 = vector.broadcast %cst_39 : f32 to vector<32x64xf32>
    %89 = arith.mulf %88, %87 : vector<32x64xf32>
    %cst_40 = arith.constant -1.45315206 : f32
    %90 = vector.broadcast %cst_40 : f32 to vector<32x64xf32>
    %91 = arith.addf %89, %90 : vector<32x64xf32>
    %92 = arith.mulf %91, %87 : vector<32x64xf32>
    %cst_41 = arith.constant 1.42141378 : f32
    %93 = vector.broadcast %cst_41 : f32 to vector<32x64xf32>
    %94 = arith.addf %92, %93 : vector<32x64xf32>
    %95 = arith.mulf %94, %87 : vector<32x64xf32>
    %cst_42 = arith.constant -0.284496725 : f32
    %96 = vector.broadcast %cst_42 : f32 to vector<32x64xf32>
    %97 = arith.addf %95, %96 : vector<32x64xf32>
    %98 = arith.mulf %97, %87 : vector<32x64xf32>
    %cst_43 = arith.constant 0.254829586 : f32
    %99 = vector.broadcast %cst_43 : f32 to vector<32x64xf32>
    %100 = arith.addf %98, %99 : vector<32x64xf32>
    %101 = arith.mulf %100, %87 : vector<32x64xf32>
    %cst_44 = arith.constant 0.000000e+00 : f32
    %102 = vector.broadcast %cst_44 : f32 to vector<32x64xf32>
    %103 = arith.subf %102, %81 : vector<32x64xf32>
    %104 = arith.mulf %103, %81 : vector<32x64xf32>
    %105 = math.exp %104 : vector<32x64xf32>
    %106 = arith.mulf %101, %105 : vector<32x64xf32>
    %cst_45 = arith.constant 1.000000e+00 : f32
    %107 = vector.broadcast %cst_45 : f32 to vector<32x64xf32>
    %108 = arith.subf %107, %106 : vector<32x64xf32>
    %cst_46 = arith.constant 0.000000e+00 : f32
    %109 = vector.broadcast %cst_46 : f32 to vector<32x64xf32>
    %110 = arith.cmpf oge, %80, %109 : vector<32x64xf32>
    %cst_47 = arith.constant 0.000000e+00 : f32
    %111 = vector.broadcast %cst_47 : f32 to vector<32x64xf32>
    %112 = arith.subf %111, %108 : vector<32x64xf32>
    %113 = arith.select %110, %108, %112 : vector<32x64xi1>, vector<32x64xf32>
    %cst_48 = arith.constant 1.000000e+00 : f32
    %114 = vector.broadcast %cst_48 : f32 to vector<32x64xf32>
    %115 = arith.addf %114, %113 : vector<32x64xf32>
    %116 = arith.mulf %78, %115 : vector<32x64xf32>
    %117 = arith.addf %116, %0 : vector<32x64xf32>
    %c0_49 = arith.constant 0 : index
    %c0_50 = arith.constant 0 : index
    %118 = vector.load %arg8[%c0_49, %c0_50] : memref<32x64xf32, #tpu.memory_space<vmem>>, vector<32x64xf32>
    tpu.vector_store %arg8[%c0_49, %c0_50], %117 {strides = array<i32>} : memref<32x64xf32, #tpu.memory_space<vmem>>, vector<32x64xf32>,
    return
  }
  func.func @transform_0(%arg0: i32) -> (i32, i32) {
    %c0_i32 = arith.constant 0 : i32
    %c0_i32_0 = arith.constant 0 : i32
    return %arg0, %c0_i32 : i32, i32
  }
  func.func @transform_1(%arg0: i32) -> (i32, i32) {
    %c0_i32 = arith.constant 0 : i32
    %c0_i32_0 = arith.constant 0 : i32
    %c0_i32_1 = arith.constant 0 : i32
    return %c0_i32, %c0_i32_0 : i32, i32
  }
  func.func @transform_2(%arg0: i32) -> (i32, i32) {
    %c0_i32 = arith.constant 0 : i32
    %c0_i32_0 = arith.constant 0 : i32
    %c0_i32_1 = arith.constant 0 : i32
    return %c0_i32, %c0_i32_0 : i32, i32
  }
  func.func @transform_3(%arg0: i32) -> (i32, i32) {
    %c0_i32 = arith.constant 0 : i32
    %c0_i32_0 = arith.constant 0 : i32
    %c0_i32_1 = arith.constant 0 : i32
    return %c0_i32, %c0_i32_0 : i32, i32
  }
  func.func @transform_4(%arg0: i32) -> (i32, i32) {
    %c0_i32 = arith.constant 0 : i32
    %c0_i32_0 = arith.constant 0 : i32
    %c0_i32_1 = arith.constant 0 : i32
    return %c0_i32, %c0_i32_0 : i32, i32
  }
  func.func @transform_5(%arg0: i32) -> (i32, i32) {
    %c0_i32 = arith.constant 0 : i32
    %c0_i32_0 = arith.constant 0 : i32
    %c0_i32_1 = arith.constant 0 : i32
    return %c0_i32, %c0_i32_0 : i32, i32
  }
  func.func @transform_6(%arg0: i32) -> (i32, i32) {
    %c0_i32 = arith.constant 0 : i32
    %c0_i32_0 = arith.constant 0 : i32
    %c0_i32_1 = arith.constant 0 : i32
    return %c0_i32, %c0_i32_0 : i32, i32
  }
  func.func @transform_7(%arg0: i32) -> (i32, i32) {
    %c0_i32 = arith.constant 0 : i32
    %c0_i32_0 = arith.constant 0 : i32
    return %arg0, %c0_i32 : i32, i32
  }
}

</mosaic_0001>

<bundles_post_ra>
// kernel: vit_forward.6
= control target key start
LH: loop header
LB: loop body
LE: loop exit
PB: predicated region body
PF: predicated region fallthrough
CT: control target
= control target key end

     0   :  { %s396_s12 = smov 0   ;;  %s434_s0 = inlined_call_operand.vmem [shape: f32[64,48], index: 0, kind: input, shape index: {}]   ;;  %s435_s1 = inlined_call_operand.vmem [shape: bf16[48,64], index: 1, kind: input, shape index: {}]   ;;  %s436_s2 = inlined_call_operand.vmem [shape: f32[32,64], index: 2, kind: input, shape index: {}]   ;;  %s437_s3 = inlined_call_operand.vmem [shape: f32[64,64], index: 3, kind: output, shape index: {}]  }
   0x1 LB: > { %s326_s13 = sadd.s32 4294967295, %s374_s12   ;;  %p330_p0 = scmp.ge.s32.totalorder %s374_s12, 1  ;;  %s374_s12 = sphi %s396_s12, %s13_s12  }
   0x2   : > { %p138_p1 = scmp.lt.s32.totalorder %s374_s12, 3 }
   0x4   : > { %p139_p2 = pnand %p330_p0, %p138_p1 }
   0x5   : > { %s331_s16 = sshll.u32 (!%p139_p2), %s326_s13, 2 }
   0x6   : > { %142 = sbr.rel (%p139_p2) target bundleno = 226 (0xe2), region = 32  ;;  %p163_p3 = scmp.lt.s32.totalorder (!%p139_p2), %s331_s16, 7 }
   0xb   : > { %v365_v0 = vld [vmem:[%s435_s1 + $0x10] sm:$0xff]   ;;  %v366_v1 = vld [vmem:[%s435_s1 + $0x8] sm:$0xff]   ;;  %s439_s16 = smov (!%p163_p3, %s331_s16), 7  ;;  %v367_v2 = vld [vmem:[%s435_s1] sm:$0xff]   ;;  %vm209_vm0 = vcmask 392192   ;;  %vm265_vm1 = vcmask 523264  }
   0xc   : > { %347 = vmatprep.subr.bf16.mxu0 %v365_v0  ;;  %s332_s21 = sshll.u32 %s439_s16, 3  ;;  %v187_v10 = vld [vmem:[%s436_s2] sm:$0xff]  ;;  %v188_v14 = vld [vmem:[%s436_s2 + $0x8] sm:$0xff]  ;;  %v189_v15 = vld [vmem:[%s436_s2 + $0x10] sm:$0xff] }
   0xd   : > { %348 = vmatpush3.bf16.msra.mxu0 %v365_v0  ;;  %s166_s24 = scalar_lea.vmem %s434_s0, %s332_s21  ;;  %s172_s29 = scalar_lea.vmem %s437_s3, %s332_s21  ;;  %v190_v16 = vld [vmem:[%s436_s2 + $0x18] sm:$0xff] }
   0xe   : > { %349 = vmatprep.subr.bf16.mxu0 %v366_v1  ;;  %v175_v3 = vld [vmem:[%s166_s24] sm:$0xff]  ;;  %v176_v4 = vld [vmem:[%s166_s24 + $0x8] sm:$0xff]  ;;  %v177_v5 = vld [vmem:[%s166_s24 + $0x10] sm:$0xff] }
   0xf   : > { %v179_v6 = vpack.c.bf16 %v176_v4, %v175_v3  ;;  %v178_v7 = vld [vmem:[%s166_s24 + $0x18] sm:$0xff] }
  0x10   : > { %v180_v8 = vpack.c.bf16 %v178_v7, %v177_v5 }
  0x11   : > { %350 = vmatpush3.bf16.msra.mxu0 %v366_v1  ;;  %353 = vmatprep.mubr.msk.bf16.mxu0 %vm209_vm0, %v179_v6 }
  0x12   : > { %351 = vmatprep.subr.bf16.mxu0 %v367_v2 }
  0x15   : > { %352 = vmatpush3.bf16.msra.mxu0 %v367_v2 }
  0x18   : > { %354 = vmatmul.mubr.msk.bf16.vlgmr.msra.gmra.mxu0 %vm209_vm0, %v180_v8 }
  0xd8   : > { %v355_v9 = vpop.f32.mrf.mxu0 }
  0xd9   : > { %v259_v19 = vadd.f32 %v355_v9, %v189_v15 }
  0xda   : > { %v250_v11 = vpop.f32.mrf.mxu0 }
  0xdb   : > { %v251_v12 = vadd.f32 %v250_v11, %v187_v10  ;;  %268 = vst.msk [vmem:[%s172_s29 + $0x10] sm:$0xff] %vm265_vm1, %v259_v19 }
  0xdc   : > { %v356_v13 = vpop.f32.mrf.mxu0 }
  0xdd   : > { %266 = vst.msk [vmem:[%s172_s29] sm:$0xff] %vm265_vm1, %v251_v12  ;;  %v262_v20 = vadd.f32 %v356_v13, %v190_v16 }
  0xde   : > { %v253_v17 = vpop.f32.mrf.mxu0 }
  0xdf   : > { %v254_v18 = vadd.f32 %v253_v17, %v188_v14  ;;  %269 = vst.msk [vmem:[%s172_s29 + $0x18] sm:$0xff] %vm265_vm1, %v262_v20 }
  0xe1   : > { %267 = vst.msk [vmem:[%s172_s29 + $0x8] sm:$0xff] %vm265_vm1, %v254_v18 }
  0xe2 PF: > { %s13_s12 = sadd.s32 1, %s374_s12  }
  0xe3   : > { %p10_p4 = scmp.ge.s32.totalorder %s13_s12, 4  }
  0xe5   :  { %12 = sbr.rel (!%p10_p4) target bundleno = 1 (0x1), region = 62 }

// kernel: vit_forward.11
= control target key start
LH: loop header
LB: loop body
LE: loop exit
PB: predicated region body
PF: predicated region fallthrough
CT: control target
= control target key end

     0   :  { %vm25_vm0 = vcmask 517120   ;;  %s269_s0 = inlined_call_operand.vmem [shape: f32[2,64], index: 0, kind: input, shape index: {}]   ;;  %s270_s1 = inlined_call_operand.vmem [shape: f32[1,64], index: 1, kind: input, shape index: {}]   ;;  %s271_s2 = inlined_call_operand.vmem [shape: f32[1,64], index: 2, kind: input, shape index: {}]   ;;  %s272_s3 = inlined_call_operand.vmem [shape: bf16[64,128], index: 3, kind: input, shape index: {}]   ;;  %s273_s4 = inlined_call_operand.vmem [shape: f32[1,128], index: 4, kind: input, shape index: {}]   ;;  %s274_s5 = inlined_call_operand.hbm [shape: f32[2,128], index: 5, kind: output, shape index: {}]  }
   0x1   :  { %v22_v0 = vld [vmem:[%s269_s0] sm:$0x3] }
   0x2   :  { %v26_v1 = vsel %vm25_vm0, %v22_v0, 0.0 }
   0x3   :  { %27 = vadd.xlane.f32.xlu0 %v26_v1 }
   0x4   :  { %10 = vsyncpa [#allocation3], 0  ;;  %v181_v7 = vld [vmem:[%s272_s3 + $0x18] sm:$0xff]   ;;  %v209_v8 = vmov 0.0   ;;  %vm210_vm1 = vmmov 0   ;;  %v182_v9 = vld [vmem:[%s272_s3 + $0x10] sm:$0xff]  }
   0x5   :  { %166 = vmatprep.subr.bf16.mxu0 %v209_v8  ;;  %174 = vmatprep.mubr.msk.bf16.mxu0 %vm210_vm1, %v209_v8  ;;  %v183_v10 = vld [vmem:[%s272_s3 + $0x8] sm:$0xff]   ;;  %v184_v11 = vld [vmem:[%s272_s3] sm:$0xff]   ;;  %vm94_vm2 = vcmask 523264   ;;  %s211_s7 = smov [#allocation2]  }
   0x6   :  { %167 = vmatpush3.bf16.msra.mxu0 %v181_v7  ;;  %v153_v16 = vld [vmem:[%s270_s1] ss:$0 sm:$0xff]  ;;  %s145_s8 = sshll.u32 %s211_s7, 4  ;;  %s146_s8 = int_to_ptr.vmem [resolvable:$true] %s145_s8 }
   0x7   :  { %168 = vmatprep.subr.bf16.mxu0 %v209_v8  ;;  %v154_v18 = vld [vmem:[%s271_s2] ss:$0 sm:$0xff]  ;;  %s187_s1 = scalar_lea.vmem %s146_s8, 32  ;;  %p192_p1 = scmp.lt.s32.totalorder %s146_s8, %s146_s8 }
   0x8   :  { %v155_v22 = vld [vmem:[%s273_s4] ss:$0 sm:$0xff]  ;;  %p188_p0 = scmp.ne.s32.totalorder %s146_s8, %s187_s1  ;;  %p193_p2 = scmp.lt.s32.totalorder %s187_s1, %s187_s1 }
   0xa   :  { %169 = vmatpush3.bf16.msra.mxu0 %v182_v9  ;;  %p194_p3 = por %p193_p2, %p192_p1 }
   0xb   :  { %170 = vmatprep.subr.bf16.mxu0 %v209_v8 }
   0xc   :  { %p195_p4 = pnand %p194_p3, %p188_p0 }
   0xe   :  { %171 = vmatpush3.bf16.msra.mxu0 %v183_v10 }
   0xf   :  { %172 = vmatprep.subr.bf16.mxu0 %v209_v8 }
  0x12   :  { %173 = vmatpush3.bf16.msra.mxu0 %v184_v11 }
  0x8c   :  { %v28_v2 = vpop.xlane.xlu0 %27 }
  0x8d   :  { %v30_v3 = vmul.f32 0.015625, %v28_v2 }
  0x8f   :  { %v31_v4 = vsub.f32 %v22_v0, %v30_v3 }
  0x91   :  { %v32_v5 = vmul.f32 %v31_v4, %v31_v4 }
  0x93   :  { %v33_v6 = vsel %vm25_vm0, %v32_v5, 0.0 }
  0x94   :  { %34 = vadd.xlane.f32.xlu0 %v33_v6 }
 0x11d   :  { %v35_v12 = vpop.xlane.xlu0 %34 }
 0x11e   :  { %v36_v13 = vmul.f32 0.015625, %v35_v12 }
 0x120   :  { %v37_v14 = vadd.f32 1e-05, %v36_v13 }
 0x122   :  { %185 = vrsqrt.f32 %v37_v14 }
 0x12f   :  { %v186_v15 = vpop.eup %185 }
 0x130   :  { %v39_v17 = vmul.f32 %v186_v15, %v31_v4 }
 0x132   :  { %v46_v19 = vmul.f32 %v153_v16, %v39_v17 }
 0x134   :  { %v53_v20 = vadd.f32 %v154_v18, %v46_v19 }
 0x136   :  { %v54_v21 = vpack.c.bf16 %v53_v20, %v53_v20 }
 0x138   :  { %175 = vmatmul.mubr.msk.bf16.vlgmr.msra.gmra.mxu0 %vm94_vm2, %v54_v21 }
 0x1f8   :  { %v132_v23 = vpop.f32.mrf.mxu0 }
 0x1f9   :  { %v133_v24 = vadd.f32 %v155_v22, %v132_v23 }
 0x1fa   :  { %v176_v25 = vpop.f32.mrf.mxu0 }
 0x1fb   :  { %138 = vst [vmem:[#allocation2] sm:$0x3] %v133_v24 }
 0x1fc   :  { %v135_v26 = vpop.f32.mrf.mxu0 }
 0x1fd   :  { %198 = shalt.err (!%p195_p4)
}
 0x1fe   :  { %148 = dma.vmem_to_hbm [thread:$0]  %s146_s8, 32, %s274_s5, [#allocation3]   ;;  %v177_v27 = vpop.f32.mrf.mxu0 }
 0x1ff   :  { %207 = dma.done.wait [#allocation3], 32  }
 0x200   :  { %208 = vsyncadd [#allocation3], 4294967264 }
 0x201   :  { %152 = vsyncpa [#allocation3], 1 }

// kernel: vit_forward.8
= control target key start
LH: loop header
LB: loop body
LE: loop exit
PB: predicated region body
PF: predicated region fallthrough
CT: control target
= control target key end

     0   :  { %s1046_s24 = smov 0   ;;  %s1216_s0 = inlined_call_operand.vmem [shape: f32[64,64], index: 0, kind: input, shape index: {}]   ;;  %s1217_s1 = inlined_call_operand.vmem [shape: f32[1,64], index: 1, kind: input, shape index: {}]   ;;  %s1218_s2 = inlined_call_operand.vmem [shape: f32[1,64], index: 2, kind: input, shape index: {}]   ;;  %s1219_s3 = inlined_call_operand.vmem [shape: bf16[64,128], index: 3, kind: input, shape index: {}]   ;;  %s1220_s4 = inlined_call_operand.vmem [shape: f32[1,128], index: 4, kind: input, shape index: {}]   ;;  %s1221_s5 = inlined_call_operand.vmem [shape: bf16[128,64], index: 5, kind: input, shape index: {}]   ;;  %s1222_s6 = inlined_call_operand.vmem [shape: f32[1,64], index: 6, kind: input, shape index: {}]   ;;  %s1223_s7 = inlined_call_operand.vmem [shape: f32[64,64], index: 7, kind: output, shape index: {}]  }
   0x1 LB: > { %s861_s25 = sadd.s32 4294967295, %s1004_s24   ;;  %p865_p0 = scmp.ge.s32.totalorder %s1004_s24, 1  ;;  %s1004_s24 = sphi %s1046_s24, %s17_s24  }
   0x2   : > { %p238_p1 = scmp.lt.s32.totalorder %s1004_s24, 3 }
   0x4   : > { %p239_p2 = pnand %p865_p0, %p238_p1 }
   0x5   : > { %s866_s26 = sshll.u32 (!%p239_p2), %s861_s25, 2 }
   0x6   : > { %242 = sbr.rel (%p239_p2) target bundleno = 845 (0x34d), region = 48  ;;  %p271_p3 = scmp.lt.s32.totalorder (!%p239_p2), %s866_s26, 7 }
   0xb   : > { %s1225_s26 = smov (!%p271_p3, %s866_s26), 7  ;;  %vm289_vm0 = vcmask 523264   ;;  %v946_v28 = vld [vmem:[%s1219_s3 + $0x18] sm:$0xff]   ;;  %v947_v29 = vld [vmem:[%s1219_s3 + $0x10] sm:$0xff]   ;;  %v948_v30 = vld [vmem:[%s1219_s3 + $0x8] sm:$0xff]  }
   0xc   : > { %s867_s27 = sshll.u32 %s1225_s26, 3  ;;  %906 = vmatprep.subr.bf16.mxu0 %v946_v28  ;;  %v949_v31 = vld [vmem:[%s1219_s3] sm:$0xff]  }
   0xd   : > { %s274_s30 = scalar_lea.vmem %s1216_s0, %s867_s27  ;;  %907 = vmatpush3.bf16.msra.mxu0 %v946_v28  ;;  %v870_v46 = vld [vmem:[%s1217_s1] ss:$0 sm:$0xff]  ;;  %s280_s22 = scalar_lea.vmem %s1223_s7, %s867_s27 }
   0xe   : > { %v1062_v0 = vld [vmem:[%s274_s30] sm:$0xff]  ;;  %v1064_v1 = vld [vmem:[%s274_s30 + $0x10] sm:$0xff]  ;;  %v1066_v2 = vld [vmem:[%s274_s30 + $0x8] sm:$0xff]  ;;  %908 = vmatprep.subr.bf16.mxu0 %v947_v29 }
   0xf   : > { %v290_v3 = vsel %vm289_vm0, %v1062_v0, 0.0  ;;  %v296_v4 = vsel %vm289_vm0, %v1064_v1, 0.0  ;;  %v1072_v5 = vld [vmem:[%s274_s30 + $0x18] sm:$0xff]  ;;  %v293_v6 = vsel %vm289_vm0, %v1066_v2, 0.0  ;;  %v871_v51 = vld [vmem:[%s1218_s2] ss:$0 sm:$0xff] }
  0x10   : > { %291 = vadd.xlane.f32.xlu0 %v290_v3  ;;  %297 = vadd.xlane.f32.xlu1 %v296_v4  ;;  %v299_v7 = vsel %vm289_vm0, %v1072_v5, 0.0  ;;  %v950_v3 = vld [vmem:[%s1221_s5 + $0x38] sm:$0xff]   ;;  %v951_v4 = vld [vmem:[%s1221_s5 + $0x30] sm:$0xff]  }
  0x11   : > { %909 = vmatpush3.bf16.msra.mxu0 %v947_v29  ;;  %918 = vmatprep.subr.bf16.mxu1 %v950_v3 }
  0x12   : > { %910 = vmatprep.subr.bf16.mxu0 %v948_v30  ;;  %919 = vmatpush3.bf16.msra.mxu1 %v950_v3 }
  0x13   : > { %920 = vmatprep.subr.bf16.mxu1 %v951_v4 }
  0x14   : > { %294 = vadd.xlane.f32.xlu0 %v293_v6  ;;  %300 = vadd.xlane.f32.xlu1 %v299_v7  ;;  %v952_v6 = vld [vmem:[%s1221_s5 + $0x28] sm:$0xff]   ;;  %v953_v7 = vld [vmem:[%s1221_s5 + $0x20] sm:$0xff]  }
  0x15   : > { %911 = vmatpush3.bf16.msra.mxu0 %v948_v30 }
  0x16   : > { %912 = vmatprep.subr.bf16.mxu0 %v949_v31  ;;  %921 = vmatpush3.bf16.msra.mxu1 %v951_v4 }
  0x17   : > { %922 = vmatprep.subr.bf16.mxu1 %v952_v6 }
  0x19   : > { %913 = vmatpush3.bf16.msra.mxu0 %v949_v31 }
  0x1a   : > { %923 = vmatpush3.bf16.msra.mxu1 %v952_v6 }
  0x1b   : > { %924 = vmatprep.subr.bf16.mxu1 %v953_v7 }
  0x1e   : > { %925 = vmatpush3.bf16.msra.mxu1 %v953_v7 }
  0x99   : > { %v292_v8 = vpop.xlane.xlu0 %291  ;;  %v298_v9 = vpop.xlane.xlu1 %297 }
  0x9a   : > { %v303_v10 = vmul.f32 0.015625, %v292_v8  ;;  %v305_v11 = vmul.f32 0.015625, %v298_v9  ;;  %v954_v8 = vld [vmem:[%s1221_s5 + $0x18] sm:$0xff]   ;;  %v955_v9 = vld [vmem:[%s1221_s5 + $0x10] sm:$0xff]  }
  0x9b   : > { %926 = vmatprep.subr.bf16.mxu1 %v954_v8 }
  0x9c   : > { %v307_v12 = vsub.f32 %v1062_v0, %v303_v10  ;;  %v309_v13 = vsub.f32 %v1064_v1, %v305_v11  ;;  %927 = vmatpush3.bf16.msra.mxu1 %v954_v8  ;;  %v956_v10 = vld [vmem:[%s1221_s5 + $0x8] sm:$0xff]   ;;  %v957_v11 = vld [vmem:[%s1221_s5] sm:$0xff]  }
  0x9d   : > { %v295_v14 = vpop.xlane.xlu0 %294  ;;  %v301_v15 = vpop.xlane.xlu1 %300  ;;  %928 = vmatprep.subr.bf16.mxu1 %v955_v9 }
  0x9e   : > { %v304_v16 = vmul.f32 0.015625, %v295_v14  ;;  %v306_v17 = vmul.f32 0.015625, %v301_v15  ;;  %v311_v18 = vmul.f32 %v307_v12, %v307_v12  ;;  %v313_v19 = vmul.f32 %v309_v13, %v309_v13 }
  0xa0   : > { %v308_v20 = vsub.f32 %v1066_v2, %v304_v16  ;;  %v310_v21 = vsub.f32 %v1072_v5, %v306_v17  ;;  %v315_v22 = vsel %vm289_vm0, %v311_v18, 0.0  ;;  %v321_v23 = vsel %vm289_vm0, %v313_v19, 0.0  ;;  %929 = vmatpush3.bf16.msra.mxu1 %v955_v9 }
  0xa1   : > { %316 = vadd.xlane.f32.xlu0 %v315_v22  ;;  %930 = vmatprep.subr.bf16.mxu1 %v956_v10 }
  0xa2   : > { %v312_v24 = vmul.f32 %v308_v20, %v308_v20  ;;  %v314_v25 = vmul.f32 %v310_v21, %v310_v21 }
  0xa4   : > { %v318_v26 = vsel %vm289_vm0, %v312_v24, 0.0  ;;  %v324_v27 = vsel %vm289_vm0, %v314_v25, 0.0  ;;  %931 = vmatpush3.bf16.msra.mxu1 %v956_v10 }
  0xa5   : > { %322 = vadd.xlane.f32.xlu0 %v321_v23  ;;  %319 = vadd.xlane.f32.xlu1 %v318_v26 }
  0xa6   : > { %932 = vmatprep.subr.bf16.mxu1 %v957_v11 }
  0xa8   : > { %933 = vmatpush3.bf16.msra.mxu1 %v957_v11 }
  0xa9   : > { %325 = vadd.xlane.f32.xlu1 %v324_v27 }
 0x12a   : > { %v317_v32 = vpop.xlane.xlu0 %316 }
 0x12b   : > { %v327_v33 = vmul.f32 0.015625, %v317_v32 }
 0x12d   : > { %v331_v34 = vadd.f32 1e-05, %v327_v33 }
 0x12e   : > { %v320_v35 = vpop.xlane.xlu1 %319  ;;  %v323_v36 = vpop.xlane.xlu0 %322 }
 0x12f   : > { %958 = vrsqrt.f32 %v331_v34  ;;  %v328_v37 = vmul.f32 0.015625, %v320_v35  ;;  %v329_v38 = vmul.f32 0.015625, %v323_v36 }
 0x131   : > { %v332_v39 = vadd.f32 1e-05, %v328_v37  ;;  %v333_v40 = vadd.f32 1e-05, %v329_v38 }
 0x132   : > { %v326_v41 = vpop.xlane.xlu1 %325 }
 0x133   : > { %960 = vrsqrt.f32 %v332_v39  ;;  %v330_v42 = vmul.f32 0.015625, %v326_v41 }
 0x134   : > { %962 = vrsqrt.f32 %v333_v40 }
 0x135   : > { %v334_v43 = vadd.f32 1e-05, %v330_v42 }
 0x137   : > { %964 = vrsqrt.f32 %v334_v43 }
 0x13c   : > { %v959_v44 = vpop.eup %958 }
 0x13d   : > { %v339_v45 = vmul.f32 %v959_v44, %v307_v12  ;;  %v872_v12 = vld [vmem:[%s1220_s4] ss:$0 sm:$0xff] }
 0x13f   : > { %v349_v50 = vmul.f32 %v870_v46, %v339_v45 }
 0x140   : > { %v961_v47 = vpop.eup %960 }
 0x141   : > { %v963_v48 = vpop.eup %962  ;;  %v340_v49 = vmul.f32 %v961_v47, %v308_v20  ;;  %v359_v55 = vadd.f32 %v871_v51, %v349_v50 }
 0x142   : > { %v341_v52 = vmul.f32 %v963_v48, %v309_v13 }
 0x143   : > { %v350_v53 = vmul.f32 %v870_v46, %v340_v49 }
 0x144   : > { %v965_v54 = vpop.eup %964  ;;  %v351_v58 = vmul.f32 %v870_v46, %v341_v52 }
 0x145   : > { %v360_v56 = vadd.f32 %v871_v51, %v350_v53  ;;  %v342_v57 = vmul.f32 %v965_v54, %v310_v21 }
 0x146   : > { %v361_v61 = vadd.f32 %v871_v51, %v351_v58 }
 0x147   : > { %v363_v59 = vpack.c.bf16 %v360_v56, %v359_v55  ;;  %v352_v60 = vmul.f32 %v870_v46, %v342_v57 }
 0x149   : > { %914 = vmatprep.mubr.msk.bf16.mxu0 %vm289_vm0, %v363_v59  ;;  %v362_v62 = vadd.f32 %v871_v51, %v352_v60 }
 0x14b   : > { %v364_v63 = vpack.c.bf16 %v362_v62, %v361_v61 }
 0x14d   : > { %915 = vmatmul.mubr.msk.bf16.vlgmr.msra.gmra.mxu0 %vm289_vm0, %v364_v63 }
 0x20d   : > { %v916_v13 = vpop.f32.mrf.mxu0 }
 0x20e   : > { %v1133_v14 = vadd.f32 %v916_v13, %v872_v12 }
 0x20f   : > { %v444_v15 = vpop.f32.mrf.mxu0 }
 0x210   : > { %v1136_v16 = vmul.f32 0.70710677, %v1133_v14  ;;  %v1138_v17 = vadd.f32 %v872_v12, %v444_v15 }
 0x211   : > { %v917_v18 = vpop.f32.mrf.mxu0 }
 0x212   : > { %v469_v19 = vand.u32 2147483647, %v1136_v16  ;;  %v1142_v20 = vmul.f32 0.70710677, %v1138_v17  ;;  %v1144_v21 = vadd.f32 %v917_v18, %v872_v12  ;;  %vm549_vm2 = vcmp.ge.f32.partialorder %v1136_v16, 0.0 }
 0x213   : > { %v447_v22 = vpop.f32.mrf.mxu0 }
 0x214   : > { %v473_v23 = vmul.f32 0.3275911, %v469_v19  ;;  %v467_v24 = vand.u32 2147483647, %v1142_v20  ;;  %v1148_v25 = vmul.f32 0.70710677, %v1144_v21  ;;  %v1150_v26 = vadd.f32 %v872_v12, %v447_v22 }
 0x215   : > { %v525_v37 = vsub.f32 0.0, %v469_v19  ;;  %vm547_vm1 = vcmp.ge.f32.partialorder %v1142_v20, 0.0  ;;  %v459_v20 = vmul.f32 0.5, %v1138_v17 }
 0x216   : > { %v477_v27 = vadd.f32 1.0, %v473_v23  ;;  %v471_v28 = vmul.f32 0.3275911, %v467_v24  ;;  %v470_v29 = vand.u32 2147483647, %v1148_v25  ;;  %v523_v38 = vsub.f32 0.0, %v467_v24 }
 0x217   : > { %v1154_v30 = vmul.f32 0.70710677, %v1150_v26  ;;  %v529_v39 = vmul.f32 %v525_v37, %v469_v19  ;;  %vm550_vm3 = vcmp.ge.f32.partialorder %v1148_v25, 0.0  ;;  %v461_v25 = vmul.f32 0.5, %v1133_v14 }
 0x218   : > { %966 = vrcp.f32 %v477_v27  ;;  %v475_v31 = vadd.f32 1.0, %v471_v28  ;;  %v474_v32 = vmul.f32 0.3275911, %v470_v29  ;;  %v526_v40 = vsub.f32 0.0, %v470_v29 }
 0x219   : > { %v468_v33 = vand.u32 2147483647, %v1154_v30  ;;  %v527_v42 = vmul.f32 %v523_v38, %v467_v24  ;;  %v535_v44 = vmul.f32 1.442695, %v529_v39  ;;  %vm548_vm4 = vcmp.ge.f32.partialorder %v1154_v30, 0.0 }
 0x21a   : > { %968 = vrcp.f32 %v475_v31  ;;  %v478_v34 = vadd.f32 1.0, %v474_v32  ;;  %v530_v46 = vmul.f32 %v526_v40, %v470_v29 }
 0x21b   : > { %v472_v35 = vmul.f32 0.3275911, %v468_v33  ;;  %v524_v45 = vsub.f32 0.0, %v468_v33  ;;  %v531_v49 = vmul.f32 1.442695, %v527_v42 }
 0x21c   : > { %970 = vrcp.f32 %v478_v34  ;;  %v537_v55 = vmul.f32 1.442695, %v530_v46 }
 0x21d   : > { %v476_v36 = vadd.f32 1.0, %v472_v35  ;;  %v528_v53 = vmul.f32 %v524_v45, %v468_v33 }
 0x21f   : > { %972 = vrcp.f32 %v476_v36  ;;  %v533_v62 = vmul.f32 1.442695, %v528_v53 }
 0x220   : > { %974 = vpow2.f32 %v535_v44 }
 0x221   : > { %976 = vpow2.f32 %v531_v49 }
 0x222   : > { %978 = vpow2.f32 %v537_v55 }
 0x223   : > { %980 = vpow2.f32 %v533_v62 }
 0x225   : > { %v967_v41 = vpop.eup %966 }
 0x226   : > { %v489_v43 = vmul.f32 1.0614054, %v967_v41 }
 0x227   : > { %v969_v47 = vpop.eup %968 }
 0x228   : > { %v493_v48 = vadd.f32 -1.4531521, %v489_v43  ;;  %v487_v50 = vmul.f32 1.0614054, %v969_v47 }
 0x229   : > { %v971_v51 = vpop.eup %970 }
 0x22a   : > { %v497_v52 = vmul.f32 %v967_v41, %v493_v48  ;;  %v490_v54 = vmul.f32 1.0614054, %v971_v51  ;;  %v491_v56 = vadd.f32 -1.4531521, %v487_v50 }
 0x22c   : > { %v501_v57 = vadd.f32 1.4214138, %v497_v52  ;;  %v973_v58 = vpop.eup %972  ;;  %v494_v59 = vadd.f32 -1.4531521, %v490_v54  ;;  %v495_v60 = vmul.f32 %v969_v47, %v491_v56 }
 0x22d   : > { %v488_v63 = vmul.f32 1.0614054, %v973_v58  ;;  %v975_v27 = vpop.eup %974 }
 0x22e   : > { %v505_v61 = vmul.f32 %v967_v41, %v501_v57  ;;  %v498_v3 = vmul.f32 %v971_v51, %v494_v59  ;;  %v499_v4 = vadd.f32 1.4214138, %v495_v60  ;;  %v977_v35 = vpop.eup %976  ;;  %v462_v59 = vmul.f32 0.5, %v1144_v21  ;;  %v879_v21 = vld [vmem:[%s1222_s6] ss:$0 sm:$0xff] }
 0x22f   : > { %v492_v7 = vadd.f32 -1.4531521, %v488_v63  ;;  %v979_v40 = vpop.eup %978 }
 0x230   : > { %v509_v6 = vadd.f32 -0.28449672, %v505_v61  ;;  %v502_v8 = vadd.f32 1.4214138, %v498_v3  ;;  %v503_v9 = vmul.f32 %v969_v47, %v499_v4  ;;  %v981_v46 = vpop.eup %980  ;;  %v460_v61 = vmul.f32 0.5, %v1150_v26 }
 0x231   : > { %v496_v11 = vmul.f32 %v973_v58, %v492_v7 }
 0x232   : > { %v513_v10 = vmul.f32 %v967_v41, %v509_v6  ;;  %v506_v12 = vmul.f32 %v971_v51, %v502_v8  ;;  %v507_v13 = vadd.f32 -0.28449672, %v503_v9 }
 0x233   : > { %v500_v18 = vadd.f32 1.4214138, %v496_v11 }
 0x234   : > { %v517_v15 = vadd.f32 0.2548296, %v513_v10  ;;  %v510_v19 = vadd.f32 -0.28449672, %v506_v12  ;;  %v511_v22 = vmul.f32 %v969_v47, %v507_v13 }
 0x235   : > { %v504_v24 = vmul.f32 %v973_v58, %v500_v18 }
 0x236   : > { %v521_v23 = vmul.f32 %v967_v41, %v517_v15  ;;  %v514_v28 = vmul.f32 %v971_v51, %v510_v19  ;;  %v515_v29 = vadd.f32 0.2548296, %v511_v22 }
 0x237   : > { %v508_v32 = vadd.f32 -0.28449672, %v504_v24 }
 0x238   : > { %v541_v31 = vmul.f32 %v975_v27, %v521_v23  ;;  %v518_v33 = vadd.f32 0.2548296, %v514_v28  ;;  %v519_v34 = vmul.f32 %v969_v47, %v515_v29 }
 0x239   : > { %v512_v36 = vmul.f32 %v973_v58, %v508_v32 }
 0x23a   : > { %v545_v37 = vsub.f32 1.0, %v541_v31  ;;  %v522_v38 = vmul.f32 %v971_v51, %v518_v33  ;;  %v539_v39 = vmul.f32 %v977_v35, %v519_v34 }
 0x23b   : > { %v516_v42 = vadd.f32 0.2548296, %v512_v36 }
 0x23c   : > { %v542_v43 = vmul.f32 %v979_v40, %v522_v38  ;;  %v543_v44 = vsub.f32 1.0, %v539_v39  ;;  %v553_v41 = vsub.f32 0.0, %v545_v37 }
 0x23d   : > { %v520_v45 = vmul.f32 %v973_v58, %v516_v42 }
 0x23e   : > { %v546_v48 = vsub.f32 1.0, %v542_v43  ;;  %v551_v49 = vsub.f32 0.0, %v543_v44  ;;  %v557_v53 = vsel %vm549_vm2, %v545_v37, %v553_v41 }
 0x23f   : > { %v540_v50 = vmul.f32 %v981_v46, %v520_v45  ;;  %v561_v58 = vadd.f32 1.0, %v557_v53 }
 0x240   : > { %v554_v52 = vsub.f32 0.0, %v546_v48  ;;  %v555_v51 = vsel %vm547_vm1, %v543_v44, %v551_v49 }
 0x241   : > { %v544_v47 = vsub.f32 1.0, %v540_v50  ;;  %v559_v57 = vadd.f32 1.0, %v555_v51  ;;  %v565_v4 = vmul.f32 %v561_v58, %v461_v25 }
 0x242   : > { %v558_v54 = vsel %vm550_vm3, %v546_v48, %v554_v52 }
 0x243   : > { %v562_v55 = vadd.f32 1.0, %v558_v54  ;;  %v552_v56 = vsub.f32 0.0, %v544_v47  ;;  %v563_v63 = vmul.f32 %v559_v57, %v459_v20 }
 0x245   : > { %v556_v60 = vsel %vm548_vm4, %v544_v47, %v552_v56  ;;  %v566_v62 = vmul.f32 %v562_v55, %v462_v59 }
 0x246   : > { %v560_v16 = vadd.f32 1.0, %v556_v60 }
 0x247   : > { %v568_v7 = vpack.c.bf16 %v566_v62, %v565_v4 }
 0x248   : > { %v564_v3 = vmul.f32 %v560_v16, %v460_v61 }
 0x24a   : > { %v567_v6 = vpack.c.bf16 %v564_v3, %v563_v63 }
 0x24c   : > { %934 = vmatprep.mubr.bf16.mxu1 %v567_v6 }
 0x24d   : > { %935 = vmatmul.mubr.bf16.vlgmr.msra.gmra.mxu1 %v568_v7 }
 0x30d   : > { %v936_v30 = vpop.f32.mrf.mxu1 }
 0x30e   : > { %v1168_v8 = vadd.f32 %v936_v30, %v879_v21 }
 0x30f   : > { %v674_v17 = vpop.f32.mrf.mxu1 }
 0x310   : > { %v1171_v26 = vmul.f32 0.70710677, %v1168_v8  ;;  %v1173_v14 = vadd.f32 %v879_v21, %v674_v17 }
 0x311   : > { %v937_v9 = vpop.f32.mrf.mxu1 }
 0x312   : > { %v699_v10 = vand.u32 2147483647, %v1171_v26  ;;  %v1177_v11 = vmul.f32 0.70710677, %v1173_v14  ;;  %v1179_v12 = vadd.f32 %v937_v9, %v879_v21  ;;  %vm779_vm5 = vcmp.ge.f32.partialorder %v1171_v26, 0.0 }
 0x313   : > { %v677_v13 = vpop.f32.mrf.mxu1 }
 0x314   : > { %v703_v15 = vmul.f32 0.3275911, %v699_v10  ;;  %v697_v18 = vand.u32 2147483647, %v1177_v11  ;;  %v1183_v19 = vmul.f32 0.70710677, %v1179_v12  ;;  %v1185_v22 = vadd.f32 %v879_v21, %v677_v13 }
 0x315   : > { %v755_v36 = vsub.f32 0.0, %v699_v10  ;;  %vm777_vm6 = vcmp.ge.f32.partialorder %v1177_v11, 0.0  ;;  %v691_v11 = vmul.f32 0.5, %v1168_v8 }
 0x316   : > { %v707_v23 = vadd.f32 1.0, %v703_v15  ;;  %v701_v24 = vmul.f32 0.3275911, %v697_v18  ;;  %v700_v27 = vand.u32 2147483647, %v1183_v19  ;;  %v753_v37 = vsub.f32 0.0, %v697_v18 }
 0x317   : > { %v1189_v28 = vmul.f32 0.70710677, %v1185_v22  ;;  %v759_v38 = vmul.f32 %v755_v36, %v699_v10  ;;  %vm780_vm7 = vcmp.ge.f32.partialorder %v1183_v19, 0.0  ;;  %v692_v19 = vmul.f32 0.5, %v1179_v12 }
 0x318   : > { %982 = vrcp.f32 %v707_v23  ;;  %v705_v29 = vadd.f32 1.0, %v701_v24  ;;  %v704_v31 = vmul.f32 0.3275911, %v700_v27  ;;  %v756_v39 = vsub.f32 0.0, %v700_v27 }
 0x319   : > { %v698_v32 = vand.u32 2147483647, %v1189_v28  ;;  %v757_v42 = vmul.f32 %v753_v37, %v697_v18  ;;  %v765_v44 = vmul.f32 1.442695, %v759_v38  ;;  %vm778_vm8 = vcmp.ge.f32.partialorder %v1189_v28, 0.0 }
 0x31a   : > { %984 = vrcp.f32 %v705_v29  ;;  %v708_v33 = vadd.f32 1.0, %v704_v31  ;;  %v760_v46 = vmul.f32 %v756_v39, %v700_v27 }
 0x31b   : > { %v702_v34 = vmul.f32 0.3275911, %v698_v32  ;;  %v754_v45 = vsub.f32 0.0, %v698_v32  ;;  %v761_v50 = vmul.f32 1.442695, %v757_v42 }
 0x31c   : > { %986 = vrcp.f32 %v708_v33  ;;  %v767_v55 = vmul.f32 1.442695, %v760_v46 }
 0x31d   : > { %v706_v35 = vadd.f32 1.0, %v702_v34  ;;  %v758_v51 = vmul.f32 %v754_v45, %v698_v32 }
 0x31f   : > { %988 = vrcp.f32 %v706_v35  ;;  %v763_v61 = vmul.f32 1.442695, %v758_v51 }
 0x320   : > { %990 = vpow2.f32 %v765_v44 }
 0x321   : > { %992 = vpow2.f32 %v761_v50 }
 0x322   : > { %994 = vpow2.f32 %v767_v55 }
 0x323   : > { %996 = vpow2.f32 %v763_v61 }
 0x325   : > { %v983_v40 = vpop.eup %982 }
 0x326   : > { %v719_v43 = vmul.f32 1.0614054, %v983_v40 }
 0x327   : > { %v985_v41 = vpop.eup %984 }
 0x328   : > { %v723_v48 = vadd.f32 -1.4531521, %v719_v43  ;;  %v717_v49 = vmul.f32 1.0614054, %v985_v41 }
 0x329   : > { %v987_v52 = vpop.eup %986 }
 0x32a   : > { %v727_v47 = vmul.f32 %v983_v40, %v723_v48  ;;  %v721_v53 = vadd.f32 -1.4531521, %v717_v49  ;;  %v720_v54 = vmul.f32 1.0614054, %v987_v52 }
 0x32c   : > { %v731_v56 = vadd.f32 1.4214138, %v727_v47  ;;  %v989_v57 = vpop.eup %988  ;;  %v725_v58 = vmul.f32 %v985_v41, %v721_v53  ;;  %v724_v59 = vadd.f32 -1.4531521, %v720_v54 }
 0x32d   : > { %v718_v20 = vmul.f32 1.0614054, %v989_v57  ;;  %v991_v23 = vpop.eup %990 }
 0x32e   : > { %v735_v60 = vmul.f32 %v983_v40, %v731_v56  ;;  %v729_v16 = vadd.f32 1.4214138, %v725_v58  ;;  %v728_v25 = vmul.f32 %v987_v52, %v724_v59  ;;  %v993_v34 = vpop.eup %992 }
 0x32f   : > { %v722_v63 = vadd.f32 -1.4531521, %v718_v20  ;;  %v995_v39 = vpop.eup %994 }
 0x330   : > { %v739_v62 = vadd.f32 -0.28449672, %v735_v60  ;;  %v733_v3 = vmul.f32 %v985_v41, %v729_v16  ;;  %v732_v4 = vadd.f32 1.4214138, %v728_v25  ;;  %v690_v60 = vmul.f32 0.5, %v1185_v22 }
 0x331   : > { %v726_v7 = vmul.f32 %v989_v57, %v722_v63 }
 0x332   : > { %v743_v6 = vmul.f32 %v983_v40, %v739_v62  ;;  %v737_v21 = vadd.f32 -0.28449672, %v733_v3  ;;  %v736_v30 = vmul.f32 %v987_v52, %v732_v4 }
 0x333   : > { %v730_v9 = vadd.f32 1.4214138, %v726_v7 }
 0x334   : > { %v747_v17 = vadd.f32 0.2548296, %v743_v6  ;;  %v741_v10 = vmul.f32 %v985_v41, %v737_v21  ;;  %v740_v13 = vadd.f32 -0.28449672, %v736_v30 }
 0x335   : > { %v734_v18 = vmul.f32 %v989_v57, %v730_v9 }
 0x336   : > { %v751_v15 = vmul.f32 %v983_v40, %v747_v17  ;;  %v745_v24 = vadd.f32 0.2548296, %v741_v10  ;;  %v744_v27 = vmul.f32 %v987_v52, %v740_v13  ;;  %v997_v40 = vpop.eup %996 }
 0x337   : > { %v738_v31 = vadd.f32 -0.28449672, %v734_v18 }
 0x338   : > { %v771_v29 = vmul.f32 %v991_v23, %v751_v15  ;;  %v749_v32 = vmul.f32 %v985_v41, %v745_v24  ;;  %v748_v33 = vadd.f32 0.2548296, %v744_v27 }
 0x339   : > { %v742_v36 = vmul.f32 %v989_v57, %v738_v31 }
 0x33a   : > { %v775_v35 = vsub.f32 1.0, %v771_v29  ;;  %v769_v37 = vmul.f32 %v993_v34, %v749_v32  ;;  %v752_v38 = vmul.f32 %v987_v52, %v748_v33  ;;  %v689_v52 = vmul.f32 0.5, %v1173_v14 }
 0x33b   : > { %v746_v42 = vadd.f32 0.2548296, %v742_v36 }
 0x33c   : > { %v783_v43 = vsub.f32 0.0, %v775_v35  ;;  %v773_v44 = vsub.f32 1.0, %v769_v37  ;;  %v772_v45 = vmul.f32 %v995_v39, %v752_v38 }
 0x33d   : > { %v750_v46 = vmul.f32 %v989_v57, %v746_v42 }
 0x33e   : > { %v781_v48 = vsub.f32 0.0, %v773_v44  ;;  %v776_v49 = vsub.f32 1.0, %v772_v45  ;;  %v787_v50 = vsel %vm779_vm5, %v775_v35, %v783_v43 }
 0x33f   : > { %v770_v41 = vmul.f32 %v997_v40, %v750_v46  ;;  %v791_v56 = vadd.f32 1.0, %v787_v50 }
 0x340   : > { %v785_v47 = vsel %vm777_vm6, %v773_v44, %v781_v48  ;;  %v784_v51 = vsub.f32 0.0, %v776_v49 }
 0x341   : > { %v789_v53 = vadd.f32 1.0, %v785_v47  ;;  %v774_v54 = vsub.f32 1.0, %v770_v41  ;;  %v795_v61 = vmul.f32 %v791_v56, %v691_v11 }
 0x342   : > { %v788_v55 = vsel %vm780_vm7, %v776_v49, %v784_v51 }
 0x343   : > { %v793_v57 = vmul.f32 %v789_v53, %v689_v52  ;;  %v782_v58 = vsub.f32 0.0, %v774_v54  ;;  %v792_v26 = vadd.f32 1.0, %v788_v55  ;;  %v799_v63 = vadd.f32 %v795_v61, %v1064_v1 }
 0x345   : > { %v797_v14 = vadd.f32 %v793_v57, %v1062_v0  ;;  %v786_v59 = vsel %vm778_vm8, %v774_v54, %v782_v58  ;;  %v796_v16 = vmul.f32 %v792_v26, %v692_v19  ;;  %803 = vst.msk [vmem:[%s280_s22 + $0x10] sm:$0xff] %vm289_vm0, %v799_v63 }
 0x346   : > { %v790_v20 = vadd.f32 1.0, %v786_v59 }
 0x347   : > { %801 = vst.msk [vmem:[%s280_s22] sm:$0xff] %vm289_vm0, %v797_v14  ;;  %v800_v28 = vadd.f32 %v796_v16, %v1072_v5 }
 0x348   : > { %v794_v25 = vmul.f32 %v790_v20, %v690_v60 }
 0x349   : > { %804 = vst.msk [vmem:[%s280_s22 + $0x18] sm:$0xff] %vm289_vm0, %v800_v28 }
 0x34a   : > { %v798_v62 = vadd.f32 %v794_v25, %v1066_v2 }
 0x34c   : > { %802 = vst.msk [vmem:[%s280_s22 + $0x8] sm:$0xff] %vm289_vm0, %v798_v62 }
 0x34d PF: > { %s17_s24 = sadd.s32 1, %s1004_s24  }
 0x34e   : > { %p14_p4 = scmp.ge.s32.totalorder %s17_s24, 4  }
 0x350   :  { %16 = sbr.rel (!%p14_p4) target bundleno = 1 (0x1), region = 78 }

// kernel: vit_forward.7
= control target key start
LH: loop header
LB: loop body
LE: loop exit
PB: predicated region body
PF: predicated region fallthrough
CT: control target
= control target key end

     0   :  { %s1777_s24 = smov 0   ;;  %s2102_s0 = inlined_call_operand.vmem [shape: f32[64,64], index: 0, kind: input, shape index: {}]   ;;  %s2103_s1 = inlined_call_operand.vmem [shape: f32[1,64], index: 1, kind: input, shape index: {}]   ;;  %s2104_s2 = inlined_call_operand.vmem [shape: f32[1,64], index: 2, kind: input, shape index: {}]   ;;  %s2105_s3 = inlined_call_operand.vmem [shape: bf16[64,192], index: 3, kind: input, shape index: {}]   ;;  %s2106_s4 = inlined_call_operand.vmem [shape: f32[1,192], index: 4, kind: input, shape index: {}]   ;;  %s2107_s5 = inlined_call_operand.vmem [shape: bf16[64,64], index: 5, kind: input, shape index: {}]   ;;  %s2108_s6 = inlined_call_operand.vmem [shape: f32[1,64], index: 6, kind: input, shape index: {}]   ;;  %s2109_s7 = inlined_call_operand.vmem [shape: f32[64,64], index: 7, kind: output, shape index: {}]  }
   0x1 LB: > { %s1413_s25 = sadd.s32 4294967295, %s1726_s24   ;;  %p1417_p0 = scmp.ge.s32.totalorder %s1726_s24, 1  ;;  %s1726_s24 = sphi %s1777_s24, %s17_s24  }
   0x2   : > { %p238_p1 = scmp.lt.s32.totalorder %s1726_s24, 3 }
   0x4   : > { %p239_p2 = pnand %p1417_p0, %p238_p1 }
   0x5   : > { %s1418_s26 = sshll.u32 (!%p239_p2), %s1413_s25, 2  ;;  %s1729_s11 = smov (!%p239_p2), 48  }
   0x6   : > { %242 = sbr.rel (%p239_p2) target bundleno = 2328 (0x918), region = 48  ;;  %p271_p3 = scmp.lt.s32.totalorder (!%p239_p2), %s1418_s26, 7 }
   0x7   : > { %s1730_s12 = smov (!%p239_p2), 64   ;;  %s1731_s13 = smov (!%p239_p2), 112  }
   0x8   : > { %s1732_s14 = smov (!%p239_p2), 32   ;;  %s1733_s15 = smov (!%p239_p2), 96  }
   0x9   : > { %s1735_s16 = smov (!%p239_p2), 16   ;;  %s1736_s17 = smov (!%p239_p2), 80  }
   0xb   : > { %s2111_s26 = smov (!%p271_p3, %s1418_s26), 7  ;;  %vm289_vm0 = vcmask 523264   ;;  %v1628_v28 = vld [vmem:[%s2105_s3 + $0x34] ss:$8 sps:$4 sm:$0xff]   ;;  %v1630_v29 = vld [vmem:[%s2105_s3 + $0x30] ss:$8 sps:$4 sm:$0xff]  }
   0xc   : > { %s1419_s27 = sshll.u32 %s2111_s26, 3  ;;  %v1631_v30 = vld [vmem:[%s2105_s3 + $0x24] ss:$8 sps:$4 sm:$0xff]   ;;  %439 = vmatprep.subr.bf16.mxu0 %v1628_v28  ;;  %v1633_v31 = vld [vmem:[%s2105_s3 + $0x20] ss:$8 sps:$4 sm:$0xff]   ;;  %v1728_v32 = vmov 0  }
   0xd   : > { %s1793_s30 = scalar_lea.vmem %s2102_s0, %s1419_s27  ;;  %440 = vmatpush1.bf16.msra.mxu0 %v1630_v29  ;;  %463 = vmatprep.mubr.bf16.mxu0 %v1728_v32  ;;  %v1634_v33 = vld [vmem:[%s2105_s3 + $0x14] ss:$8 sps:$4 sm:$0xff]   ;;  %v1636_v34 = vld [vmem:[%s2105_s3 + $0x10] ss:$8 sps:$4 sm:$0xff]   ;;  %v1637_v35 = vld [vmem:[%s2105_s3 + $0x4] ss:$8 sps:$4 sm:$0xff]  }
   0xe   : > { %v283_v0 = vld [vmem:[%s1793_s30] sm:$0xff]  ;;  %v285_v1 = vld [vmem:[%s1793_s30 + $0x10] sm:$0xff]  ;;  %v284_v2 = vld [vmem:[%s1793_s30 + $0x8] sm:$0xff]  ;;  %441 = vmatprep.subr.bf16.mxu0 %v1631_v30  ;;  %vm498_vm1 = vcmask 130048   ;;  %vm560_vm3 = vcmask 261120   ;;  %vm1248_vm4 = vcmask 392192  }
   0xf   : > { %v290_v3 = vsel %vm289_vm0, %v283_v0, 0.0  ;;  %v296_v4 = vsel %vm289_vm0, %v285_v1, 0.0  ;;  %v286_v5 = vld [vmem:[%s1793_s30 + $0x18] sm:$0xff]  ;;  %v293_v6 = vsel %vm289_vm0, %v284_v2, 0.0  ;;  %v1639_v36 = vld [vmem:[%s2105_s3] ss:$8 sps:$4 sm:$0xff]  }
  0x10   : > { %291 = vadd.xlane.f32.xlu0 %v290_v3  ;;  %297 = vadd.xlane.f32.xlu1 %v296_v4  ;;  %v299_v7 = vsel %vm289_vm0, %v286_v5, 0.0  ;;  %v1422_v51 = vld [vmem:[%s2103_s1] ss:$0 sm:$0xff] }
  0x11   : > { %442 = vmatpush1.bf16.msra.mxu0 %v1633_v31  ;;  %v1423_v56 = vld [vmem:[%s2104_s2] ss:$0 sm:$0xff] }
  0x12   : > { %443 = vmatprep.subr.bf16.mxu0 %v1634_v33 }
  0x14   : > { %294 = vadd.xlane.f32.xlu0 %v293_v6  ;;  %300 = vadd.xlane.f32.xlu1 %v299_v7 }
  0x15   : > { %444 = vmatpush1.bf16.msra.mxu0 %v1636_v34 }
  0x16   : > { %445 = vmatprep.subr.bf16.mxu0 %v1637_v35 }
  0x19   : > { %446 = vmatpush1.bf16.msra.mxu0 %v1639_v36 }
  0x99   : > { %v292_v8 = vpop.xlane.xlu0 %291  ;;  %v298_v9 = vpop.xlane.xlu1 %297 }
  0x9a   : > { %v303_v10 = vmul.f32 0.015625, %v292_v8  ;;  %v305_v11 = vmul.f32 0.015625, %v298_v9  ;;  %v373_v8 = vld [vmem:[%s2106_s4] sm:$0x3] }
  0x9c   : > { %v307_v12 = vsub.f32 %v283_v0, %v303_v10  ;;  %v1803_v13 = vsub.f32 %v285_v1, %v305_v11 }
  0x9d   : > { %v295_v14 = vpop.xlane.xlu0 %294  ;;  %v301_v15 = vpop.xlane.xlu1 %300 }
  0x9e   : > { %v304_v16 = vmul.f32 0.015625, %v295_v14  ;;  %v306_v17 = vmul.f32 0.015625, %v301_v15  ;;  %v311_v18 = vmul.f32 %v307_v12, %v307_v12  ;;  %v313_v19 = vmul.f32 %v1803_v13, %v1803_v13 }
  0xa0   : > { %v308_v20 = vsub.f32 %v284_v2, %v304_v16  ;;  %v310_v21 = vsub.f32 %v286_v5, %v306_v17  ;;  %v315_v22 = vsel %vm289_vm0, %v311_v18, 0.0  ;;  %v321_v23 = vsel %vm289_vm0, %v313_v19, 0.0 }
  0xa1   : > { %316 = vadd.xlane.f32.xlu0 %v315_v22  ;;  %v375_v5 = vlaneseq }
  0xa2   : > { %v312_v24 = vmul.f32 %v308_v20, %v308_v20  ;;  %v314_v25 = vmul.f32 %v310_v21, %v310_v21 }
  0xa3   : > { %v376_v6 = vshrl.u32 %v375_v5, 7 }
  0xa4   : > { %v318_v26 = vsel %vm289_vm0, %v312_v24, 0.0  ;;  %v324_v27 = vsel %vm289_vm0, %v314_v25, 0.0 }
  0xa5   : > { %322 = vadd.xlane.f32.xlu0 %v321_v23  ;;  %319 = vadd.xlane.f32.xlu1 %v318_v26  ;;  %v377_v7 = vsub.s32 0, %v376_v6  ;;  %v381_v9 = vsub.s32 1, %v376_v6 }
  0xa7   : > { %v378_v11 = vrot.slane %v373_v8, %v377_v7 }
  0xa9   : > { %325 = vadd.xlane.f32.xlu1 %v324_v27 }
 0x12a   : > { %v317_v37 = vpop.xlane.xlu0 %316 }
 0x12b   : > { %v327_v38 = vmul.f32 0.015625, %v317_v37 }
 0x12d   : > { %v331_v39 = vadd.f32 1e-05, %v327_v38 }
 0x12e   : > { %v320_v40 = vpop.xlane.xlu1 %319  ;;  %v323_v41 = vpop.xlane.xlu0 %322 }
 0x12f   : > { %1644 = vrsqrt.f32 %v331_v39  ;;  %v328_v42 = vmul.f32 0.015625, %v320_v40  ;;  %v329_v43 = vmul.f32 0.015625, %v323_v41 }
 0x131   : > { %v332_v44 = vadd.f32 1e-05, %v328_v42  ;;  %v333_v45 = vadd.f32 1e-05, %v329_v43 }
 0x132   : > { %v326_v46 = vpop.xlane.xlu1 %325 }
 0x133   : > { %1646 = vrsqrt.f32 %v332_v44  ;;  %v330_v47 = vmul.f32 0.015625, %v326_v46 }
 0x134   : > { %1648 = vrsqrt.f32 %v333_v45 }
 0x135   : > { %v334_v48 = vadd.f32 1e-05, %v330_v47 }
 0x137   : > { %1650 = vrsqrt.f32 %v334_v48  ;;  %v485_v48 = vand.u32 127, %v375_v5 }
 0x139   : > { %vm486_vm2 = vcmp.lt.s32.totalorder %v485_v48, 17 }
 0x13c   : > { %v1645_v49 = vpop.eup %1644 }
 0x13d   : > { %v339_v50 = vmul.f32 %v1645_v49, %v307_v12 }
 0x13f   : > { %v349_v54 = vmul.f32 %v1422_v51, %v339_v50 }
 0x140   : > { %v1647_v52 = vpop.eup %1646 }
 0x141   : > { %v340_v53 = vmul.f32 %v1647_v52, %v308_v20  ;;  %v1649_v55 = vpop.eup %1648  ;;  %v359_v59 = vadd.f32 %v1423_v56, %v349_v54 }
 0x142   : > { %v341_v61 = vmul.f32 %v1649_v55, %v1803_v13  ;;  %v382_v13 = vrot.slane %v373_v8, %v381_v9 }
 0x143   : > { %v350_v57 = vmul.f32 %v1422_v51, %v340_v53 }
 0x144   : > { %v1651_v58 = vpop.eup %1650  ;;  %v351_v1 = vmul.f32 %v1422_v51, %v341_v61 }
 0x145   : > { %v360_v60 = vadd.f32 %v1423_v56, %v350_v57  ;;  %v342_v62 = vmul.f32 %v1651_v58, %v310_v21 }
 0x146   : > { %v361_v3 = vadd.f32 %v1423_v56, %v351_v1 }
 0x147   : > { %v363_v63 = vpack.c.bf16 %v360_v60, %v359_v59  ;;  %v352_v0 = vmul.f32 %v1422_v51, %v342_v62  ;;  %v1734_v51 = vmov -1e+30  }
 0x148   : > { %v1899_v52 = vsel %vm486_vm2, 0.0, %v1734_v51 }
 0x149   : > { %1432 = vmatmul.mubr.msk.bf16.vlgmr.msra.gmra.mxu0 %vm289_vm0, %v363_v63  ;;  %v362_v2 = vadd.f32 %v1423_v56, %v352_v0 }
 0x14a   : > { %473 = vmatprep.mubr.bf16.mxu0 %v1728_v32 }
 0x14b   : > { %v364_v4 = vpack.c.bf16 %v362_v2, %v361_v3 }
 0x151   : > { %1433 = vmatmul.mubr.msk.bf16.gmra.mxu0 %vm289_vm0, %v364_v4 }
 0x209   : > { %v465_v10 = vpop.f32.mrf.mxu0 }
 0x20a   : > { %v466_v15 = vadd.f32 %v465_v10, %v378_v11 }
 0x20b   : > { %v467_v12 = vpop.f32.mrf.mxu0 }
 0x20c   : > { %v468_v18 = vadd.f32 %v467_v12, %v382_v13 }
 0x20d   : > { %v469_v14 = vpop.f32.mrf.mxu0 }
 0x20e   : > { %v470_v16 = vadd.f32 %v469_v14, %v378_v11 }
 0x20f   : > { %v471_v17 = vpop.f32.mrf.mxu0 }
 0x210   : > { %v1848_v19 = vpack.c.bf16 %v470_v16, %v466_v15  ;;  %v472_v20 = vadd.f32 %v471_v17, %v382_v13 }
 0x211   : > { %v475_v21 = vpop.f32.mrf.mxu0 }
 0x212   : > { %v1850_v22 = vpack.c.bf16 %v472_v20, %v468_v18  ;;  %1501 = vmatprep.mubr.msk.bf16.mxu1 %vm498_vm1, %v1848_v19  ;;  %v476_v25 = vadd.f32 %v475_v21, %v378_v11 }
 0x213   : > { %v477_v23 = vpop.f32.mrf.mxu0 }
 0x214   : > { %v478_v36 = vadd.f32 %v477_v23, %v382_v13 }
 0x215   : > { %v479_v24 = vpop.f32.mrf.mxu0 }
 0x216   : > { %v480_v26 = vadd.f32 %v479_v24, %v378_v11 }
 0x217   : > { %v481_v32 = vpop.f32.mrf.mxu0 }
 0x218   : > { %v1854_v27 = vpack.c.bf16 %v480_v26, %v476_v25  ;;  %v482_v35 = vadd.f32 %v481_v32, %v382_v13 }
 0x21a   : > { %668 = vrot.lane.b32.xlu1 %v1854_v27, %s1729_s11  ;;  %496 = vrot.lane.b32.xlu0 %v1854_v27, %s1730_s12  ;;  %v1880_v38 = vpack.c.bf16 %v482_v35, %v478_v36 }
 0x21e   : > { %494 = vrot.lane.b32.xlu1 %v1848_v19, %s1730_s12  ;;  %662 = vrot.lane.b32.xlu0 %v1848_v19, %s1731_s13 }
 0x222   : > { %666 = vrot.lane.b32.xlu1 %v1848_v19, %s1729_s11  ;;  %664 = vrot.lane.b32.xlu0 %v1854_v27, %s1731_s13 }
 0x226   : > { %846 = vrot.lane.b32.xlu1 %v1854_v27, %s1732_s14  ;;  %840 = vrot.lane.b32.xlu0 %v1848_v19, %s1733_s15 }
 0x22a   : > { %844 = vrot.lane.b32.xlu1 %v1848_v19, %s1732_s14 }
 0x22e   : > { %842 = vrot.lane.b32.xlu1 %v1854_v27, %s1733_s15 }
 0x28c   : > { %v669_v28 = vpop.permute.xlu1 %668  ;;  %v497_v29 = vpop.permute.xlu0 %496 }
 0x28d   : > { %v680_v30 = vsel %vm498_vm1, %v669_v28, 0  ;;  %1573 = vmatprep.subr.msk.bf16.mxu1 %vm498_vm1, %v497_v29  ;;  %1575 = vmatprep.subr.msk.bf16.mxu0 %vm498_vm1, %v669_v28  ;;  %v509_v31 = vsel %vm498_vm1, %v497_v29, 0 }
 0x28e   : > { %1498 = vmatpush3.bf16.xpose.msra.mxu1 %v509_v31  ;;  %1514 = vmatpush3.bf16.xpose.msra.mxu0 %v680_v30 }
 0x290   : > { %v495_v33 = vpop.permute.xlu1 %494  ;;  %v663_v34 = vpop.permute.xlu0 %662 }
 0x291   : > { %1574 = vmatprep.subr.msk.bf16.mxu1 %vm498_vm1, %v495_v33  ;;  %1517 = vmatprep.mubr.msk.bf16.mxu0 %vm498_vm1, %v663_v34  ;;  %v506_v40 = vsel %vm498_vm1, %v495_v33, 0 }
 0x294   : > { %v667_v37 = vpop.permute.xlu1 %666  ;;  %v665_v41 = vpop.permute.xlu0 %664 }
 0x295   : > { %v677_v39 = vsel %vm498_vm1, %v667_v37, 0  ;;  %1576 = vmatprep.subr.msk.bf16.mxu0 %vm498_vm1, %v667_v37 }
 0x296   : > { %1500 = vmatpush3.bf16.xpose.msra.mxu1 %v506_v40  ;;  %1516 = vmatpush3.bf16.xpose.msra.mxu0 %v677_v39 }
 0x297   : > { %1505 = vmatprep.subr.bf16.mxu1 %v1880_v38 }
 0x298   : > { %v847_v42 = vpop.permute.xlu1 %846  ;;  %v841_v44 = vpop.permute.xlu0 %840 }
 0x299   : > { %1577 = vmatprep.subr.msk.bf16.mxu0 %vm498_vm1, %v847_v42  ;;  %v858_v43 = vsel %vm498_vm1, %v847_v42, 0 }
 0x29c   : > { %v845_v45 = vpop.permute.xlu1 %844 }
 0x29d   : > { %1502 = vmatmul.mubr.msk.bf16.vlgmr.msra.gmra.mxu1 %vm498_vm1, %v1854_v27  ;;  %1518 = vmatmul.mubr.msk.bf16.vlgmr.msra.gmra.mxu0 %vm498_vm1, %v665_v41  ;;  %v855_v46 = vsel %vm498_vm1, %v845_v45, 0 }
 0x29e   : > { %1506 = vmatpush3.bf16.msra.mxu1 %v1880_v38  ;;  %1530 = vmatpush3.bf16.xpose.msra.mxu0 %v858_v43 }
 0x29f   : > { %1533 = vmatprep.mubr.msk.bf16.mxu0 %vm498_vm1, %v841_v44  ;;  %1507 = vmatprep.subr.bf16.mxu1 %v1850_v22 }
 0x2a0   : > { %1578 = vmatprep.subr.msk.bf16.mxu0 %vm498_vm1, %v845_v45  ;;  %v843_v47 = vpop.permute.xlu1 %842 }
 0x2a2   : > { %1508 = vmatpush3.bf16.msra.mxu1 %v1850_v22 }
 0x2a6   : > { %1532 = vmatpush3.bf16.xpose.msra.mxu0 %v855_v46 }
 0x2ad   : > { %1534 = vmatmul.mubr.msk.bf16.vlgmr.msra.gmra.mxu0 %vm498_vm1, %v843_v47 }
 0x35d   : > { %v1503_v49 = vpop.f32.mrf.mxu1  ;;  %v1519_v50 = vpop.f32.mrf.mxu0 }
 0x35e   : > { %v554_v58 = vadd.f32 %v1503_v49, %v1899_v52  ;;  %v725_v8 = vadd.f32 %v1519_v50, %v1899_v52 }
 0x35f   : > { %v545_v53 = vpop.f32.mrf.mxu1  ;;  %v716_v54 = vpop.f32.mrf.mxu0 }
 0x360   : > { %v1902_v55 = vadd.f32 %v545_v53, %v1899_v52  ;;  %v567_v2 = vsel %vm560_vm3, %v554_v58, -inf  ;;  %v1913_v3 = vadd.f32 %v716_v54, %v1899_v52  ;;  %v737_v14 = vsel %vm560_vm3, %v725_v8, -inf }
 0x361   : > { %v1504_v56 = vpop.f32.mrf.mxu1  ;;  %v1520_v57 = vpop.f32.mrf.mxu0 }
 0x362   : > { %v561_v59 = vsel %vm560_vm3, %v1902_v55, -inf  ;;  %v557_v63 = vadd.f32 %v1504_v56, %v1899_v52  ;;  %v728_v4 = vadd.f32 %v1520_v57, %v1899_v52  ;;  %v731_v10 = vsel %vm560_vm3, %v1913_v3, -inf }
 0x363   : > { %v548_v60 = vpop.f32.mrf.mxu1  ;;  %562 = vmax.xlane.f32.xlu0 %v561_v59  ;;  %v719_v61 = vpop.f32.mrf.mxu0 }
 0x364   : > { %v549_v62 = vadd.f32 %v548_v60, %v1899_v52  ;;  %v720_v0 = vadd.f32 %v719_v61, %v1899_v52  ;;  %v570_v5 = vsel %vm560_vm3, %v557_v63, -inf  ;;  %v740_v9 = vsel %vm560_vm3, %v728_v4, -inf }
 0x366   : > { %v564_v1 = vsel %vm560_vm3, %v549_v62, -inf  ;;  %v734_v6 = vsel %vm560_vm3, %v720_v0, -inf }
 0x367   : > { %565 = vmax.xlane.f32.xlu1 %v564_v1  ;;  %568 = vmax.xlane.f32.xlu0 %v567_v2 }
 0x36b   : > { %571 = vmax.xlane.f32.xlu0 %v570_v5  ;;  %735 = vmax.xlane.f32.xlu1 %v734_v6 }
 0x36d   : > { %v1535_v7 = vpop.f32.mrf.mxu0 }
 0x36e   : > { %v1928_v17 = vadd.f32 %v1535_v7, %v1899_v52 }
 0x36f   : > { %741 = vmax.xlane.f32.xlu1 %v740_v9  ;;  %732 = vmax.xlane.f32.xlu0 %v731_v10  ;;  %v894_v11 = vpop.f32.mrf.mxu0 }
 0x370   : > { %v1923_v13 = vadd.f32 %v894_v11, %v1899_v52  ;;  %v915_v24 = vsel %vm560_vm3, %v1928_v17, -inf }
 0x371   : > { %v1536_v12 = vpop.f32.mrf.mxu0 }
 0x372   : > { %v906_v18 = vadd.f32 %v1536_v12, %v1899_v52  ;;  %v909_v21 = vsel %vm560_vm3, %v1923_v13, -inf }
 0x373   : > { %738 = vmax.xlane.f32.xlu0 %v737_v14  ;;  %v897_v15 = vpop.f32.mrf.mxu0 }
 0x374   : > { %v898_v16 = vadd.f32 %v897_v15, %v1899_v52  ;;  %v918_v23 = vsel %vm560_vm3, %v906_v18, -inf }
 0x376   : > { %v912_v20 = vsel %vm560_vm3, %v898_v16, -inf }
 0x377   : > { %913 = vmax.xlane.f32.xlu1 %v912_v20  ;;  %910 = vmax.xlane.f32.xlu0 %v909_v21 }
 0x37b   : > { %919 = vmax.xlane.f32.xlu1 %v918_v23  ;;  %916 = vmax.xlane.f32.xlu0 %v915_v24 }
 0x38c   : > { %779 = vrot.lane.b32.xlu1 %v1850_v22, %s1731_s13 }
 0x390   : > { %957 = vrot.lane.b32.xlu1 %v1880_v38, %s1733_s15 }
 0x3ec   : > { %v563_v25 = vpop.xlane.xlu0 %562 }
 0x3ed   : > { %v573_v40 = vsub.f32 %v1902_v55, %v563_v25 }
 0x3ef   : > { %v577_v46 = vmul.f32 1.442695, %v573_v40 }
 0x3f0   : > { %v566_v26 = vpop.xlane.xlu1 %565  ;;  %v569_v28 = vpop.xlane.xlu0 %568 }
 0x3f1   : > { %v575_v29 = vsub.f32 %v554_v58, %v569_v28  ;;  %v574_v35 = vsub.f32 %v549_v62, %v566_v26 }
 0x3f3   : > { %v581_v30 = vmul.f32 1.442695, %v575_v29  ;;  %v579_v42 = vmul.f32 1.442695, %v574_v35 }
 0x3f4   : > { %v736_v31 = vpop.xlane.xlu1 %735  ;;  %v572_v32 = vpop.xlane.xlu0 %571 }
 0x3f5   : > { %v576_v33 = vsub.f32 %v557_v63, %v572_v32  ;;  %1652 = vpow2.f32 %v581_v30  ;;  %v744_v43 = vsub.f32 %v720_v0, %v736_v31 }
 0x3f7   : > { %v583_v34 = vmul.f32 1.442695, %v576_v33  ;;  %v749_v48 = vmul.f32 1.442695, %v744_v43 }
 0x3f8   : > { %v742_v36 = vpop.xlane.xlu1 %741  ;;  %v733_v37 = vpop.xlane.xlu0 %732 }
 0x3f9   : > { %v746_v39 = vsub.f32 %v728_v4, %v742_v36  ;;  %1654 = vpow2.f32 %v583_v34  ;;  %v743_v12 = vsub.f32 %v1913_v3, %v733_v37 }
 0x3fb   : > { %v753_v41 = vmul.f32 1.442695, %v746_v39  ;;  %v747_v15 = vmul.f32 1.442695, %v743_v12 }
 0x3fc   : > { %v739_v44 = vpop.xlane.xlu0 %738 }
 0x3fd   : > { %1656 = vpow2.f32 %v753_v41  ;;  %v745_v45 = vsub.f32 %v725_v8, %v739_v44 }
 0x3fe   : > { %1658 = vpow2.f32 %v579_v42 }
 0x3ff   : > { %v751_v47 = vmul.f32 1.442695, %v745_v45 }
 0x400   : > { %v914_v49 = vpop.xlane.xlu1 %913  ;;  %v911_v11 = vpop.xlane.xlu0 %910 }
 0x401   : > { %1660 = vpow2.f32 %v751_v47  ;;  %v922_v51 = vsub.f32 %v898_v16, %v914_v49 }
 0x402   : > { %v1942_v50 = vpop.eup %1652  ;;  %1662 = vpow2.f32 %v577_v46 }
 0x403   : > { %1664 = vpow2.f32 %v749_v48  ;;  %v591_v54 = vsel %vm560_vm3, %v1942_v50, 0.0  ;;  %v927_v58 = vmul.f32 1.442695, %v922_v51 }
 0x404   : > { %v920_v53 = vpop.xlane.xlu1 %919  ;;  %592 = vadd.xlane.f32.xlu0 %v591_v54  ;;  %v917_v14 = vpop.xlane.xlu0 %916 }
 0x405   : > { %v924_v55 = vsub.f32 %v906_v18, %v920_v53  ;;  %v923_v16 = vsub.f32 %v1928_v17, %v917_v14  ;;  %v921_v18 = vsub.f32 %v1923_v13, %v911_v11 }
 0x406   : > { %v1946_v56 = vpop.eup %1654 }
 0x407   : > { %v931_v57 = vmul.f32 1.442695, %v924_v55  ;;  %v594_v59 = vsel %vm560_vm3, %v1946_v56, 0.0  ;;  %v929_v20 = vmul.f32 1.442695, %v923_v16 }
 0x408   : > { %595 = vadd.xlane.f32.xlu1 %v594_v59  ;;  %v925_v21 = vmul.f32 1.442695, %v921_v18  ;;  %v780_v13 = vpop.permute.xlu1 %779 }
 0x409   : > { %1666 = vpow2.f32 %v931_v57 }
 0x40a   : > { %v1950_v60 = vpop.eup %1656  ;;  %1668 = vpow2.f32 %v927_v58 }
 0x40b   : > { %v764_v61 = vsel %vm560_vm3, %v1950_v60, 0.0  ;;  %v1954_v62 = vpop.eup %1658  ;;  %1670 = vpow2.f32 %v747_v15 }
 0x40c   : > { %765 = vadd.xlane.f32.xlu1 %v764_v61  ;;  %v588_v2 = vsel %vm560_vm3, %v1954_v62, 0.0  ;;  %1672 = vpow2.f32 %v929_v20  ;;  %v958_v28 = vpop.permute.xlu1 %957 }
 0x40d   : > { %1674 = vpow2.f32 %v925_v21 }
 0x40e   : > { %v1956_v63 = vpop.eup %1660 }
 0x40f   : > { %v761_v0 = vsel %vm560_vm3, %v1956_v63, 0.0  ;;  %v1663_v1 = vpop.eup %1662 }
 0x410   : > { %762 = vadd.xlane.f32.xlu0 %v761_v0  ;;  %v1962_v4 = vpop.eup %1664  ;;  %589 = vadd.xlane.f32.xlu1 %v588_v2  ;;  %v585_v5 = vsel %vm560_vm3, %v1663_v1, 0.0 }
 0x411   : > { %v758_v6 = vsel %vm560_vm3, %v1962_v4, 0.0 }
 0x414   : > { %586 = vadd.xlane.f32.xlu0 %v585_v5  ;;  %759 = vadd.xlane.f32.xlu1 %v758_v6 }
 0x416   : > { %v1967_v7 = vpop.eup %1666 }
 0x417   : > { %v942_v8 = vsel %vm560_vm3, %v1967_v7, 0.0  ;;  %v1971_v9 = vpop.eup %1668 }
 0x418   : > { %943 = vadd.xlane.f32.xlu1 %v942_v8  ;;  %v936_v10 = vsel %vm560_vm3, %v1971_v9, 0.0  ;;  %v1671_v3 = vpop.eup %1670 }
 0x419   : > { %v755_v23 = vsel %vm560_vm3, %v1671_v3, 0.0  ;;  %v1987_v24 = vpop.eup %1672 }
 0x41a   : > { %v939_v17 = vsel %vm560_vm3, %v1987_v24, 0.0  ;;  %v1991_v25 = vpop.eup %1674 }
 0x41b   : > { %v933_v26 = vsel %vm560_vm3, %v1991_v25, 0.0 }
 0x41c   : > { %937 = vadd.xlane.f32.xlu1 %v936_v10 }
 0x42a   : > { %781 = vrot.lane.b32.xlu0 %v1880_v38, %s1731_s13 }
 0x42d   : > { %955 = vrot.lane.b32.xlu1 %v1850_v22, %s1733_s15 }
 0x431   : > { %1020 = vrot.lane.b32.xlu1 %v1848_v19, %s1735_s16 }
 0x435   : > { %1018 = vrot.lane.b32.xlu1 %v1854_v27, %s1736_s17 }
 0x449   : > { %756 = vadd.xlane.f32.xlu0 %v755_v23 }
 0x44d   : > { %940 = vadd.xlane.f32.xlu0 %v939_v17 }
 0x451   : > { %934 = vadd.xlane.f32.xlu0 %v933_v26 }
 0x467   : > { %1022 = vrot.lane.b32.xlu0 %v1854_v27, %s1735_s16 }
 0x46b   : > { %1016 = vrot.lane.b32.xlu0 %v1848_v19, %s1736_s17 }
 0x48d   : > { %v593_v30 = vpop.xlane.xlu0 %592 }
 0x491   : > { %v596_v29 = vpop.xlane.xlu1 %595 }
 0x492   : > { %1676 = vrcp.f32 %v596_v29 }
 0x495   : > { %v766_v31 = vpop.xlane.xlu1 %765 }
 0x499   : > { %v763_v32 = vpop.xlane.xlu0 %762  ;;  %v590_v33 = vpop.xlane.xlu1 %589 }
 0x49a   : > { %1678 = vrcp.f32 %v590_v33 }
 0x49b   : > { %1680 = vrcp.f32 %v593_v30 }
 0x49d   : > { %v587_v34 = vpop.xlane.xlu0 %586  ;;  %v760_v45 = vpop.xlane.xlu1 %759 }
 0x49e   : > { %1682 = vrcp.f32 %v587_v34 }
 0x49f   : > { %v1677_v36 = vpop.eup %1676  ;;  %1684 = vrcp.f32 %v763_v32 }
 0x4a0   : > { %v604_v19 = vmul.f32 %v1677_v36, %v1946_v56  ;;  %1686 = vrcp.f32 %v760_v45 }
 0x4a1   : > { %v782_v35 = vpop.permute.xlu0 %781  ;;  %v944_v46 = vpop.xlane.xlu1 %943  ;;  %1688 = vrcp.f32 %v766_v31 }
 0x4a2   : > { %1521 = vmatprep.subr.bf16.mxu1 %v782_v35 }
 0x4a5   : > { %v938_v48 = vpop.xlane.xlu1 %937 }
 0x4a7   : > { %v1679_v37 = vpop.eup %1678 }
 0x4a8   : > { %v1681_v27 = vpop.eup %1680  ;;  %v602_v41 = vmul.f32 %v1679_v37, %v1954_v62 }
 0x4a9   : > { %v603_v42 = vmul.f32 %v1681_v27, %v1942_v50  ;;  %v956_v5 = vpop.permute.xlu1 %955 }
 0x4ab   : > { %v1683_v39 = vpop.eup %1682  ;;  %v606_v44 = vpack.c.bf16 %v604_v19, %v603_v42 }
 0x4ac   : > { %v601_v40 = vmul.f32 %v1683_v39, %v1663_v1  ;;  %v1685_v51 = vpop.eup %1684 }
 0x4ad   : > { %v1687_v53 = vpop.eup %1686  ;;  %v773_v56 = vmul.f32 %v1685_v51, %v1956_v63  ;;  %v1021_v16 = vpop.permute.xlu1 %1020 }
 0x4ae   : > { %v605_v43 = vpack.c.bf16 %v602_v41, %v601_v40  ;;  %v1689_v54 = vpop.eup %1688  ;;  %v772_v58 = vmul.f32 %v1687_v53, %v1962_v4 }
 0x4af   : > { %v774_v59 = vmul.f32 %v1689_v54, %v1950_v60 }
 0x4b0   : > { %1509 = vmatprep.mubr.msk.bf16.mxu1 %vm560_vm3, %v605_v43 }
 0x4b1   : > { %1510 = vmatmul.mubr.msk.bf16.vlgmr.msra.gmra.mxu1 %vm560_vm3, %v606_v44  ;;  %v776_v62 = vpack.c.bf16 %v774_v59, %v773_v56 }
 0x4b2   : > { %1522 = vmatpush3.bf16.msra.mxu1 %v782_v35 }
 0x4b3   : > { %1523 = vmatprep.subr.bf16.mxu1 %v780_v13 }
 0x4b6   : > { %1524 = vmatpush3.bf16.msra.mxu1 %v780_v13 }
 0x4b7   : > { %1537 = vmatprep.subr.bf16.mxu1 %v958_v28 }
 0x4d2   : > { %v757_v47 = vpop.xlane.xlu0 %756 }
 0x4d3   : > { %1690 = vrcp.f32 %v757_v47 }
 0x4d6   : > { %v941_v49 = vpop.xlane.xlu0 %940 }
 0x4d7   : > { %1692 = vrcp.f32 %v941_v49 }
 0x4d8   : > { %1694 = vrcp.f32 %v938_v48 }
 0x4d9   : > { %1696 = vrcp.f32 %v944_v46 }
 0x4da   : > { %v935_v50 = vpop.xlane.xlu0 %934 }
 0x4db   : > { %1698 = vrcp.f32 %v935_v50 }
 0x4de   : > { %v1023_v8 = vpop.permute.xlu0 %1022 }
 0x4df   : > { %v1034_v14 = vsel %vm498_vm1, %v1023_v8, 0 }
 0x4e0   : > { %v1691_v55 = vpop.eup %1690 }
 0x4e1   : > { %v771_v57 = vmul.f32 %v1691_v55, %v1671_v3 }
 0x4e2   : > { %v1017_v15 = vpop.permute.xlu0 %1016 }
 0x4e3   : > { %v775_v61 = vpack.c.bf16 %v772_v58, %v771_v57 }
 0x4e4   : > { %v1693_v0 = vpop.eup %1692 }
 0x4e5   : > { %1525 = vmatprep.mubr.msk.bf16.mxu1 %vm560_vm3, %v775_v61  ;;  %v1695_v1 = vpop.eup %1694  ;;  %v951_v63 = vmul.f32 %v1693_v0, %v1987_v24 }
 0x4e6   : > { %1526 = vmatmul.mubr.msk.bf16.vlgmr.msra.gmra.mxu1 %vm560_vm3, %v776_v62  ;;  %v1697_v2 = vpop.eup %1696  ;;  %v950_v60 = vmul.f32 %v1695_v1, %v1971_v9  ;;  %v1019_v9 = vpop.permute.xlu1 %1018 }
 0x4e7   : > { %1538 = vmatpush3.bf16.msra.mxu1 %v958_v28  ;;  %v952_v10 = vmul.f32 %v1697_v2, %v1967_v7  ;;  %v1031_v7 = vsel %vm498_vm1, %v1021_v16, 0 }
 0x4e8   : > { %v1699_v6 = vpop.eup %1698  ;;  %1539 = vmatprep.subr.bf16.mxu1 %v956_v5 }
 0x4e9   : > { %v949_v4 = vmul.f32 %v1699_v6, %v1991_v25  ;;  %v954_v12 = vpack.c.bf16 %v952_v10, %v951_v63 }
 0x4eb   : > { %1540 = vmatpush3.bf16.msra.mxu1 %v956_v5  ;;  %v953_v11 = vpack.c.bf16 %v950_v60, %v949_v4 }
 0x4ec   : > { %1579 = vmatprep.subr.msk.bf16.mxu1 %vm498_vm1, %v1023_v8 }
 0x4ed   : > { %1541 = vmatprep.mubr.msk.bf16.mxu1 %vm560_vm3, %v953_v11 }
 0x4ee   : > { %1542 = vmatmul.mubr.msk.bf16.vlgmr.msra.gmra.mxu1 %vm560_vm3, %v954_v12 }
 0x4ef   : > { %1546 = vmatpush3.bf16.xpose.msra.mxu1 %v1034_v14  ;;  %1549 = vmatprep.mubr.msk.bf16.mxu1 %vm498_vm1, %v1017_v15 }
 0x4f0   : > { %1580 = vmatprep.subr.msk.bf16.mxu1 %vm498_vm1, %v1021_v16 }
 0x4f7   : > { %1548 = vmatpush3.bf16.xpose.msra.mxu1 %v1031_v7 }
 0x4fe   : > { %1550 = vmatmul.mubr.msk.bf16.vlgmr.msra.gmra.mxu1 %vm498_vm1, %v1019_v9 }
 0x571   : > { %v2021_v18 = vpop.f32.mrf.mxu1 }
 0x573   : > { %v2023_v20 = vpop.f32.mrf.mxu1 }
 0x575   : > { %v2025_v21 = vpop.f32.mrf.mxu1 }
 0x577   : > { %v2027_v3 = vpop.f32.mrf.mxu1 }
 0x5a6   : > { %v1527_v23 = vpop.f32.mrf.mxu1 }
 0x5a8   : > { %v825_v24 = vpop.f32.mrf.mxu1 }
 0x5aa   : > { %v1528_v17 = vpop.f32.mrf.mxu1 }
 0x5ab   : > { %v1603_v25 = vpack.i.bf16 %v1528_v17, %v1527_v23  ;;  %v1640_v23 = vld [vmem:[%s2107_s5 + $0x18] sm:$0xff]   ;;  %v1642_v17 = vld [vmem:[%s2107_s5 + $0x8] sm:$0xff]  }
 0x5ac   : > { %v828_v26 = vpop.f32.mrf.mxu1  ;;  %1561 = vmatprep.subr.bf16.mxu0 %v1640_v23 }
 0x5ad   : > { %v1598_v13 = vpack.i.bf16 %v828_v26, %v825_v24  ;;  %v1641_v24 = vld [vmem:[%s2107_s5 + $0x10] sm:$0xff]   ;;  %1562 = vmatpush3.bf16.msra.mxu0 %v1640_v23 }
 0x5ae   : > { %v1543_v28 = vpop.f32.mrf.mxu1  ;;  %1563 = vmatprep.subr.bf16.mxu0 %v1641_v24 }
 0x5b0   : > { %v1001_v29 = vpop.f32.mrf.mxu1 }
 0x5b1   : > { %1564 = vmatpush3.bf16.msra.mxu0 %v1641_v24 }
 0x5b2   : > { %v1544_v30 = vpop.f32.mrf.mxu1  ;;  %1565 = vmatprep.subr.bf16.mxu0 %v1642_v17 }
 0x5b3   : > { %v1613_v31 = vpack.i.bf16 %v1544_v30, %v1543_v28 }
 0x5b4   : > { %v1004_v32 = vpop.f32.mrf.mxu1 }
 0x5b5   : > { %v1608_v33 = vpack.i.bf16 %v1004_v32, %v1001_v29  ;;  %1566 = vmatpush3.bf16.msra.mxu0 %v1642_v17 }
 0x5be   : > { %v1551_v34 = vpop.f32.mrf.mxu1 }
 0x5bf   : > { %v1079_v27 = vadd.f32 %v1551_v34, %v1899_v52 }
 0x5c0   : > { %v1070_v35 = vpop.f32.mrf.mxu1 }
 0x5c1   : > { %v1071_v36 = vadd.f32 %v1070_v35, %v1899_v52  ;;  %v1091_v43 = vsel %vm560_vm3, %v1079_v27, -inf }
 0x5c2   : > { %v1552_v37 = vpop.f32.mrf.mxu1 }
 0x5c3   : > { %v1085_v39 = vsel %vm560_vm3, %v1071_v36, -inf  ;;  %v1082_v41 = vadd.f32 %v1552_v37, %v1899_v52 }
 0x5c4   : > { %v1073_v19 = vpop.f32.mrf.mxu1  ;;  %1086 = vmax.xlane.f32.xlu0 %v1085_v39 }
 0x5c5   : > { %v1074_v40 = vadd.f32 %v1073_v19, %v1899_v52  ;;  %v1094_v44 = vsel %vm560_vm3, %v1082_v41, -inf }
 0x5c7   : > { %v1088_v42 = vsel %vm560_vm3, %v1074_v40, -inf }
 0x5c8   : > { %1089 = vmax.xlane.f32.xlu1 %v1088_v42  ;;  %1092 = vmax.xlane.f32.xlu0 %v1091_v43 }
 0x5cc   : > { %1095 = vmax.xlane.f32.xlu0 %v1094_v44 }
 0x64d   : > { %v1087_v45 = vpop.xlane.xlu0 %1086 }
 0x64e   : > { %v1097_v46 = vsub.f32 %v1071_v36, %v1087_v45 }
 0x650   : > { %v1101_v53 = vmul.f32 1.442695, %v1097_v46 }
 0x651   : > { %v1090_v47 = vpop.xlane.xlu1 %1089  ;;  %v1093_v48 = vpop.xlane.xlu0 %1092 }
 0x652   : > { %v1099_v49 = vsub.f32 %v1079_v27, %v1093_v48  ;;  %v1098_v50 = vsub.f32 %v1074_v40, %v1090_v47 }
 0x654   : > { %v1105_v51 = vmul.f32 1.442695, %v1099_v49  ;;  %v1103_v52 = vmul.f32 1.442695, %v1098_v50 }
 0x655   : > { %v1096_v54 = vpop.xlane.xlu0 %1095 }
 0x656   : > { %v1100_v55 = vsub.f32 %v1082_v41, %v1096_v54  ;;  %1700 = vpow2.f32 %v1105_v51 }
 0x657   : > { %1702 = vpow2.f32 %v1101_v53 }
 0x658   : > { %v1107_v56 = vmul.f32 1.442695, %v1100_v55 }
 0x65a   : > { %1704 = vpow2.f32 %v1107_v56 }
 0x65b   : > { %1706 = vpow2.f32 %v1103_v52 }
 0x663   : > { %v1701_v57 = vpop.eup %1700 }
 0x664   : > { %v1115_v58 = vsel %vm560_vm3, %v1701_v57, 0.0  ;;  %v1703_v59 = vpop.eup %1702 }
 0x665   : > { %1116 = vadd.xlane.f32.xlu0 %v1115_v58  ;;  %v1109_v1 = vsel %vm560_vm3, %v1703_v59, 0.0 }
 0x667   : > { %v1705_v61 = vpop.eup %1704 }
 0x668   : > { %v1118_v62 = vsel %vm560_vm3, %v1705_v61, 0.0  ;;  %v1707_v0 = vpop.eup %1706 }
 0x669   : > { %1119 = vadd.xlane.f32.xlu1 %v1118_v62  ;;  %1110 = vadd.xlane.f32.xlu0 %v1109_v1  ;;  %v1112_v2 = vsel %vm560_vm3, %v1707_v0, 0.0 }
 0x66d   : > { %1113 = vadd.xlane.f32.xlu1 %v1112_v2  ;;  %v1716_v2 = vld [vmem:[%s1793_s30] sm:$0xff] }
 0x67e   : > { %1131 = vrot.lane.b32.xlu1 %v1850_v22, %s1736_s17 }
 0x67f   : > { %1133 = vrot.lane.b32.xlu0 %v1880_v38, %s1736_s17 }
 0x682   : > { %1599 = vrot.lane.b32.xlu1 %v1598_v13, %s1735_s16 }
 0x683   : > { %1609 = vrot.lane.b32.xlu0 %v1608_v33, %s1732_s14 }
 0x686   : > { %1604 = vrot.lane.b32.xlu1 %v1603_v25, %s1735_s16  ;;  %v1643_v25 = vld [vmem:[%s2107_s5] sm:$0xff]  }
 0x687   : > { %1567 = vmatprep.subr.bf16.mxu0 %v1643_v25 }
 0x688   : > { %1568 = vmatpush3.bf16.msra.mxu0 %v1643_v25 }
 0x68a   : > { %1614 = vrot.lane.b32.xlu1 %v1613_v31, %s1732_s14 }
 0x6ee   : > { %v1117_v5 = vpop.xlane.xlu0 %1116 }
 0x6f2   : > { %v1120_v6 = vpop.xlane.xlu1 %1119  ;;  %v1111_v8 = vpop.xlane.xlu0 %1110 }
 0x6f3   : > { %1708 = vrcp.f32 %v1120_v6 }
 0x6f4   : > { %1710 = vrcp.f32 %v1111_v8 }
 0x6f5   : > { %1712 = vrcp.f32 %v1117_v5 }
 0x6f6   : > { %v1114_v63 = vpop.xlane.xlu1 %1113  ;;  %v1134_v22 = vpop.permute.xlu0 %1133 }
 0x6f7   : > { %1714 = vrcp.f32 %v1114_v63  ;;  %1553 = vmatprep.subr.bf16.mxu1 %v1134_v22 }
 0x6f8   : > { %1554 = vmatpush3.bf16.msra.mxu1 %v1134_v22 }
 0x6fa   : > { %v1132_v38 = vpop.permute.xlu1 %1131  ;;  %v1610_v37 = vpop.permute.xlu0 %1609 }
 0x6fb   : > { %1555 = vmatprep.subr.bf16.mxu1 %v1132_v38  ;;  %v1612_v46 = vunpack.i.h.bf16 %v1610_v37  ;;  %v1611_v47 = vunpack.i.l.bf16 %v1610_v37 }
 0x6fc   : > { %1556 = vmatpush3.bf16.msra.mxu1 %v1132_v38  ;;  %v1717_v38 = vld [vmem:[%s1793_s30 + $0x8] sm:$0xff] }
 0x6fe   : > { %v1600_v32 = vpop.permute.xlu1 %1599 }
 0x6ff   : > { %v1602_v34 = vunpack.i.h.bf16 %v1600_v32  ;;  %v1601_v36 = vunpack.i.l.bf16 %v1600_v32 }
 0x700   : > { %v1709_v4 = vpop.eup %1708 }
 0x701   : > { %v1711_v60 = vpop.eup %1710  ;;  %v1128_v12 = vmul.f32 %v1709_v4, %v1705_v61  ;;  %v1241_v41 = vsel %vm498_vm1, %v2027_v3, %v1602_v34  ;;  %v1240_v43 = vsel %vm498_vm1, %v2023_v20, %v1601_v36  ;;  %v1450_v61 = vld [vmem:[%s2108_s6] ss:$0 sm:$0xff] }
 0x702   : > { %v1713_v10 = vpop.eup %1712  ;;  %v1125_v14 = vmul.f32 %v1711_v60, %v1703_v59  ;;  %v1605_v33 = vpop.permute.xlu1 %1604  ;;  %v1244_v52 = vsel %vm560_vm3, %v1240_v43, %v1611_v47  ;;  %v1718_v60 = vld [vmem:[%s1793_s30 + $0x10] sm:$0xff] }
 0x703   : > { %v1127_v16 = vmul.f32 %v1713_v10, %v1701_v57  ;;  %v1607_v27 = vunpack.i.h.bf16 %v1605_v33  ;;  %v1606_v39 = vunpack.i.l.bf16 %v1605_v33 }
 0x704   : > { %v1715_v11 = vpop.eup %1714 }
 0x705   : > { %v1126_v15 = vmul.f32 %v1715_v11, %v1707_v0  ;;  %v1130_v9 = vpack.c.bf16 %v1128_v12, %v1127_v16  ;;  %v1243_v48 = vsel %vm498_vm1, %v2025_v21, %v1607_v27  ;;  %v1242_v49 = vsel %vm498_vm1, %v2021_v18, %v1606_v39  ;;  %v1719_v11 = vld [vmem:[%s1793_s30 + $0x18] sm:$0xff] }
 0x706   : > { %v1615_v35 = vpop.permute.xlu1 %1614  ;;  %v1245_v21 = vsel %vm560_vm3, %v1241_v41, %v1612_v46 }
 0x707   : > { %v1129_v7 = vpack.c.bf16 %v1126_v15, %v1125_v14  ;;  %v1617_v19 = vunpack.i.h.bf16 %v1615_v35  ;;  %v1616_v40 = vunpack.i.l.bf16 %v1615_v35 }
 0x709   : > { %1557 = vmatprep.mubr.msk.bf16.mxu1 %vm560_vm3, %v1129_v7  ;;  %v1246_v51 = vsel %vm560_vm3, %v1242_v49, %v1616_v40  ;;  %v1247_v3 = vsel %vm560_vm3, %v1243_v48, %v1617_v19 }
 0x70a   : > { %1558 = vmatmul.mubr.msk.bf16.vlgmr.msra.gmra.mxu1 %vm560_vm3, %v1130_v9 }
 0x7ca   : > { %v1559_v26 = vpop.f32.mrf.mxu1 }
 0x7cc   : > { %v1177_v13 = vpop.f32.mrf.mxu1 }
 0x7ce   : > { %v1560_v28 = vpop.f32.mrf.mxu1 }
 0x7cf   : > { %v1623_v29 = vpack.i.bf16 %v1560_v28, %v1559_v26 }
 0x7d0   : > { %v1180_v30 = vpop.f32.mrf.mxu1 }
 0x7d1   : > { %v1618_v31 = vpack.i.bf16 %v1180_v30, %v1177_v13  ;;  %1624 = vrot.lane.b32.xlu1 %v1623_v29, %s1729_s11 }
 0x7d3   : > { %1619 = vrot.lane.b32.xlu0 %v1618_v31, %s1729_s11  ;;  %s280_s11 = scalar_lea.vmem %s2109_s7, %s1419_s27 }
 0x843   : > { %v1625_v42 = vpop.permute.xlu1 %1624 }
 0x844   : > { %v1627_v44 = vunpack.i.h.bf16 %v1625_v42  ;;  %v1626_v45 = vunpack.i.l.bf16 %v1625_v42 }
 0x845   : > { %v1620_v50 = vpop.permute.xlu0 %1619 }
 0x846   : > { %v1622_v53 = vunpack.i.h.bf16 %v1620_v50  ;;  %v1621_v54 = vunpack.i.l.bf16 %v1620_v50  ;;  %v1252_v20 = vsel %vm1248_vm4, %v1247_v3, %v1627_v44  ;;  %v1251_v55 = vsel %vm1248_vm4, %v1246_v51, %v1626_v45 }
 0x847   : > { %v1254_v58 = vpack.c.bf16 %v1252_v20, %v1251_v55 }
 0x848   : > { %v1249_v56 = vsel %vm1248_vm4, %v1244_v52, %v1621_v54  ;;  %v1250_v18 = vsel %vm1248_vm4, %v1245_v21, %v1622_v53 }
 0x849   : > { %v1253_v57 = vpack.c.bf16 %v1250_v18, %v1249_v56 }
 0x84b   : > { %1569 = vmatprep.mubr.msk.bf16.mxu0 %vm289_vm0, %v1253_v57 }
 0x84c   : > { %1570 = vmatmul.mubr.msk.bf16.vlgmr.msra.gmra.mxu0 %vm289_vm0, %v1254_v58 }
 0x90c   : > { %v1571_v59 = vpop.f32.mrf.mxu0 }
 0x90d   : > { %v1343_v6 = vadd.f32 %v1571_v59, %v1450_v61 }
 0x90e   : > { %v1334_v62 = vpop.f32.mrf.mxu0 }
 0x90f   : > { %v1335_v0 = vadd.f32 %v1450_v61, %v1334_v62  ;;  %v1351_v10 = vadd.f32 %v1718_v60, %v1343_v6 }
 0x910   : > { %v1572_v1 = vpop.f32.mrf.mxu0 }
 0x911   : > { %v1349_v5 = vadd.f32 %v1716_v2, %v1335_v0  ;;  %v1346_v63 = vadd.f32 %v1572_v1, %v1450_v61  ;;  %1355 = vst.msk [vmem:[%s280_s11 + $0x10] sm:$0xff] %vm289_vm0, %v1351_v10 }
 0x912   : > { %v1337_v8 = vpop.f32.mrf.mxu0 }
 0x913   : > { %1353 = vst.msk [vmem:[%s280_s11] sm:$0xff] %vm289_vm0, %v1349_v5  ;;  %v1338_v22 = vadd.f32 %v1450_v61, %v1337_v8  ;;  %v1352_v12 = vadd.f32 %v1719_v11, %v1346_v63 }
 0x915   : > { %v1350_v4 = vadd.f32 %v1717_v38, %v1338_v22  ;;  %1356 = vst.msk [vmem:[%s280_s11 + $0x18] sm:$0xff] %vm289_vm0, %v1352_v12 }
 0x917   : > { %1354 = vst.msk [vmem:[%s280_s11 + $0x8] sm:$0xff] %vm289_vm0, %v1350_v4 }
 0x918 PF: > { %s17_s24 = sadd.s32 1, %s1726_s24  }
 0x919   : > { %p14_p4 = scmp.ge.s32.totalorder %s17_s24, 4  }
 0x91b   :  { %16 = sbr.rel (!%p14_p4) target bundleno = 1 (0x1), region = 78 }

</bundles_post_ra>
